<compile_context>
chip_gen: v7x
topology: tpu7x:2x2x1
jax: 0.10.0
libtpu: 0.0.40
codegen_flags: <defaults>
</compile_context>

<pallas_src>
import jax
import jax.numpy as jnp
from jax.experimental import pallas as pl
from jax.experimental.pallas import tpu as pltpu


def _add_conv1x1_kernel(a_ref, b_ref, w_ref, o_ref):
    # a_ref, b_ref: (Cin, HW)   channels on sublanes, pixels on lanes
    # w_ref:        (tc, Cin)   Cout-tile of the 1x1 conv weight
    # o_ref:        (tc, HW)    lane-dense output tile
    #
    # Fused add, then feed the MXU bf16 operands with f32 accumulation.
    x = (a_ref[...] + b_ref[...]).astype(jnp.bfloat16)
    w = w_ref[...].astype(jnp.bfloat16)
    o_ref[...] = jnp.dot(
        w, x, preferred_element_type=jnp.float32
    ).astype(o_ref.dtype)


def _pick_cout_tile(cout):
    # Prefer 4 Cout blocks (2 sequential steps per v7x TensorCore -> the first
    # writeback overlaps the second block's matmul; on v5e/v6e the extra steps
    # hide the prologue DMA / final writeback), then 2, 6, 3.  Tiles must be a
    # multiple of 8 sublanes.  Fall back to a single block.
    for nblk in (4, 2, 6, 3):
        if cout % nblk == 0 and (cout // nblk) % 8 == 0:
            return cout // nblk
    return cout


def add_conv1x1(x114, x99, weight):
    """x114, x99: NCHW float32 arrays [N, Cin, H, W].
    weight: [Cout, Cin, 1, 1] (PyTorch Conv2d layout).
    Returns NCHW [N, Cout, H, W]."""
    N, Cin, H, W = x114.shape
    Cout = weight.shape[0]
    HW = H * W

    # NCHW -> (N, Cin, H*W): contiguous reshape, no copy / transpose.
    a = x114.reshape(N, Cin, HW)
    b = x99.reshape(N, Cin, HW)
    # (Cout, Cin, 1, 1) -> (Cout, Cin); used directly as the matmul LHS.
    w = weight.reshape(Cout, Cin)

    tc = _pick_cout_tile(Cout)
    grid = (N, Cout // tc)

    itemsize = jnp.dtype(x114.dtype).itemsize
    flops = 2 * N * Cout * Cin * HW
    bytes_accessed = (
        2 * N * Cin * HW * itemsize      # a + b reads
        + Cout * Cin * itemsize          # weight read
        + N * Cout * HW * itemsize       # output write
    )

    # Blocks: inputs are the full (Cin, HW) slab per batch element (block
    # index constant over the Cout axis -> fetched once, kept resident on
    # single-TC chips; v7x's second TC re-DMAs it, which we accept -- HW=3136
    # has no divisor that is a multiple of 128, so lane-axis sharding isn't
    # available without padding).  Output tile is (tc, HW), lane-dense.
    out = pl.pallas_call(
        _add_conv1x1_kernel,
        out_shape=jax.ShapeDtypeStruct((N, Cout, HW), x114.dtype),
        grid_spec=pltpu.PrefetchScalarGridSpec(
            num_scalar_prefetch=0,
            grid=grid,
            in_specs=[
                pl.BlockSpec((None, Cin, HW), lambda n, c: (n, 0, 0)),
                pl.BlockSpec((None, Cin, HW), lambda n, c: (n, 0, 0)),
                pl.BlockSpec((tc, Cin), lambda n, c: (c, 0)),
            ],
            out_specs=pl.BlockSpec((None, tc, HW), lambda n, c: (n, c, 0)),
        ),
        compiler_params=pltpu.CompilerParams(
            dimension_semantics=("parallel", "parallel"),
        ),
        cost_estimate=pl.CostEstimate(
            flops=flops,
            bytes_accessed=bytes_accessed,
            transcendentals=0,
        ),
    )(a, b, w)

    # (N, Cout, H*W) -> NCHW: contiguous reshape, no copy.
    return out.reshape(N, Cout, H, W)


if __name__ == "__main__":
    key = jax.random.PRNGKey(0)
    k1, k2, k3 = jax.random.split(key, 3)

    # Shapes implied by the module: N=1, Cin=48, Cout=288, 56x56 spatial.
    N, Cin, H, W = 1, 48, 56, 56
    Cout = 288

    x114 = jax.random.normal(k1, (N, Cin, H, W), dtype=jnp.float32)
    x99 = jax.random.normal(k2, (N, Cin, H, W), dtype=jnp.float32)
    # Deterministic Conv2d(48, 288, 1, bias=False) weight.
    weight = jax.random.normal(k3, (Cout, Cin, 1, 1), dtype=jnp.float32) * 0.05

    y = add_conv1x1(x114, x99, weight)
    jax.block_until_ready(y)

    # Reference check in plain JAX (same math: add then 1x1 conv as matmul).
    # bf16 MXU operands with f32 accumulation -> compare at bf16-level
    # tolerance against the f32 reference.
    ref = jnp.einsum("nchw,oc->nohw", x114 + x99, weight.reshape(Cout, Cin))
    assert y.shape == (N, Cout, H, W)
    assert jnp.allclose(y, ref, atol=1e-2, rtol=1e-2)

    print("KERNEL_OK")
</pallas_src>

<mosaic_0001>
module attributes {stable_mosaic.version = 11 : i64} {
  func.func @_add_conv1x1_kernel(%arg0: i32, %arg1: i32, %arg2: memref<1x48x3136xf32, #tpu.memory_space<vmem>>, %arg3: memref<1x48x3136xf32, #tpu.memory_space<vmem>>, %arg4: memref<72x48xf32, #tpu.memory_space<vmem>>, %arg5: memref<1x72x3136xf32, #tpu.memory_space<vmem>>) attributes {dimension_semantics = [#tpu.dimension_semantics<parallel>, #tpu.dimension_semantics<parallel>], iteration_bounds = array<i64: 1, 4>, scalar_prefetch = 0 : i64, scratch_operands = 0 : i64, tpu.core_type = #tpu.core_type<tc>, window_params = [{transform_indices = @transform_0, window_bounds = array<i64: 1, 48, 3136>}, {transform_indices = @transform_1, window_bounds = array<i64: 1, 48, 3136>}, {transform_indices = @transform_2, window_bounds = array<i64: 72, 48>}, {transform_indices = @transform_3, window_bounds = array<i64: 1, 72, 3136>}]} {
    %c0 = arith.constant 0 : index
    %c0_0 = arith.constant 0 : index
    %c0_1 = arith.constant 0 : index
    %0 = vector.load %arg2[%c0, %c0_0, %c0_1] : memref<1x48x3136xf32, #tpu.memory_space<vmem>>, vector<1x48x3136xf32>
    %1 = vector.shape_cast %0 : vector<1x48x3136xf32> to vector<48x3136xf32>
    %c0_2 = arith.constant 0 : index
    %c0_3 = arith.constant 0 : index
    %c0_4 = arith.constant 0 : index
    %2 = vector.load %arg3[%c0_2, %c0_3, %c0_4] : memref<1x48x3136xf32, #tpu.memory_space<vmem>>, vector<1x48x3136xf32>
    %3 = vector.shape_cast %2 : vector<1x48x3136xf32> to vector<48x3136xf32>
    %4 = arith.addf %1, %3 : vector<48x3136xf32>
    %5 = arith.truncf %4 : vector<48x3136xf32> to vector<48x3136xbf16>
    %c0_5 = arith.constant 0 : index
    %c0_6 = arith.constant 0 : index
    %6 = vector.load %arg4[%c0_5, %c0_6] : memref<72x48xf32, #tpu.memory_space<vmem>>, vector<72x48xf32>
    %7 = arith.truncf %6 : vector<72x48xf32> to vector<72x48xbf16>
    %cst = arith.constant dense<0.000000e+00> : vector<72x3136xf32>
    %8 = tpu.matmul %7, %5, %cst {dimension_numbers = #tpu.dot_dimension_numbers<[1], [0], [0], [1], [0, 0, 1, 1], [], []>} : vector<72x48xbf16>, vector<48x3136xbf16>, vector<72x3136xf32> -> vector<72x3136xf32>
    %c0_7 = arith.constant 0 : index
    %c0_8 = arith.constant 0 : index
    %c0_9 = arith.constant 0 : index
    %9 = vector.load %arg5[%c0_7, %c0_8, %c0_9] : memref<1x72x3136xf32, #tpu.memory_space<vmem>>, vector<1x72x3136xf32>
    %10 = vector.shape_cast %9 : vector<1x72x3136xf32> to vector<72x3136xf32>
    %11 = vector.shape_cast %8 : vector<72x3136xf32> to vector<1x72x3136xf32>
    tpu.vector_store %arg5[%c0_7, %c0_8, %c0_9], %11 {strides = array<i32>} : memref<1x72x3136xf32, #tpu.memory_space<vmem>>, vector<1x72x3136xf32>,
    return
  }
  func.func @transform_0(%arg0: i32, %arg1: i32) -> (i32, i32, i32) {
    %c0_i32 = arith.constant 0 : i32
    %c0_i32_0 = arith.constant 0 : i32
    %c0_i32_1 = arith.constant 0 : i32
    return %arg0, %c0_i32, %c0_i32_0 : i32, i32, i32
  }
  func.func @transform_1(%arg0: i32, %arg1: i32) -> (i32, i32, i32) {
    %c0_i32 = arith.constant 0 : i32
    %c0_i32_0 = arith.constant 0 : i32
    %c0_i32_1 = arith.constant 0 : i32
    return %arg0, %c0_i32, %c0_i32_0 : i32, i32, i32
  }
  func.func @transform_2(%arg0: i32, %arg1: i32) -> (i32, i32) {
    %c0_i32 = arith.constant 0 : i32
    %c0_i32_0 = arith.constant 0 : i32
    return %arg1, %c0_i32 : i32, i32
  }
  func.func @transform_3(%arg0: i32, %arg1: i32) -> (i32, i32, i32) {
    %c0_i32 = arith.constant 0 : i32
    %c0_i32_0 = arith.constant 0 : i32
    return %arg0, %arg1, %c0_i32 : i32, i32, i32
  }
}

</mosaic_0001>

<bundles_post_ra>
// kernel: tpu_custom_call.1
= control target key start
LH: loop header
LB: loop body
LE: loop exit
PB: predicated region body
PF: predicated region fallthrough
CT: control target
= control target key end

     0   :  { %8 = vsyncpa [#allocation3], 0  ;;  %s3209_s0 = inlined_call_operand.hbm [shape: f32[1,48,3136], index: 0, kind: input, shape index: {}]   ;;  %s3210_s1 = inlined_call_operand.hbm [shape: f32[1,48,3136], index: 1, kind: input, shape index: {}]   ;;  %s3211_s2 = inlined_call_operand.vmem [shape: f32[288,48], index: 2, kind: input, shape index: {}]   ;;  %s3212_s3 = inlined_call_operand.hbm [shape: f32[1,288,3136], index: 3, kind: output, shape index: {}]  }
   0x1   :  { %9 = vsyncpa [#allocation6], 0 }
   0x2   :  { %10 = vsyncpa [#allocation4], 0 }
   0x3   :  { %12 = vsyncpa [#allocation4 + $0x1], 0  ;;  %s2552_s12 = smov 0   ;;  %s2554_s13 = smov 0  }
   0x4   :  { %s2556_s14 = smov 0   ;;  %s2558_s15 = smov 0  }
   0x5   :  { %s2560_s16 = smov 0   ;;  %s2562_s17 = smov 0  }
   0x6 LB: > { %s2174_s18 = sadd.s32 4294967295, %s2520_s17   ;;  %s2175_s19 = sadd.s32 4294967294, %s2520_s17   ;;  %s2520_s17 = sphi %s2562_s17, %s18_s17   ;;  %s2516_s16 = sphi %s2560_s16, %s3230_s16   ;;  %s2512_s15 = sphi %s2558_s15, %s3229_s15   ;;  %s2508_s14 = sphi %s2556_s14, %s3228_s14   ;;  %s2504_s13 = sphi %s2554_s13, %s3227_s13   ;;  %s2500_s12 = sphi %s2552_s12, %s3226_s12  }
   0x7   : > { %s27_s20 = sadd.s32 1, %s2516_s16  ;;  %s117_s21 = sadd.s32 1, %s2508_s14 }
   0x8   : > { %p28_p0 = scmp.ge.s32.totalorder %s27_s20, 4  ;;  %p127_p1 = scmp.ne.s32.totalorder %s2508_s14, %s2504_s13 }
   0x9   : > { %p128_p2 = scmp.eq.s32.totalorder %s2174_s18, 3  ;;  %p133_p3 = scmp.ne.s32.totalorder %s2504_s13, %s2500_s12 }
   0xa   : > { %s3232_s20 = smov (%p28_p0, %s27_s20), 0  ;;  %p134_p5 = scmp.eq.s32.totalorder %s2175_s19, 3 }
   0xb   : > { %p2592_p4 = por %p128_p2, %p127_p1  ;;  %s113_s23 = ssub.s32 %s2516_s16, %s3232_s20 }
   0xc   : > { %p2176_p6 = scmp.ge.s32.totalorder %s2520_s17, 1  ;;  %p115_p7 = scmp.eq.s32.totalorder %s113_s23, 0 }
   0xd   : > { %s3217_s22 = scalar_select %p2592_p4, 1, 0 }
   0xe   : > { %p2599_p8 = por %p134_p5, %p133_p3  ;;  %p141_p9 = scmp.lt.s32.totalorder %s2520_s17, 5 }
   0xf   : > { %s2605_s25 = scalar_select %p115_p7, %s2508_s14, %s117_s21  }
  0x10   : > { %s3218_s24 = scalar_select %p2599_p8, 1, 0 }
  0x11   : > { %p2607_p10 = pnand %p2176_p6, %p141_p9  ;;  %p2611_p11 = scmp.eq.s32.totalorder %s2174_s18, 0 }
  0x12   : > { %s2522_s28 = smov [#allocation2]   ;;  %s2523_s4 = smov [#allocation5]  }
  0x13   : > { %s3219_s26 = scalar_select %p2607_p10, 1, 0 }
  0x14   : > { %s3220_s27 = scalar_select %p2611_p11, 1, 0 }
  0x15   : > { %p2304_p12 = pneg %p2607_p10  ;;  %s156_s29 = sshll.u32 %s2522_s28, 4  ;;  %s157_s29 = int_to_ptr.vmem [resolvable:$true] %s156_s29 }
  0x16   : > { %s172_s5 = sshll.u32 %s2523_s4, 4  ;;  %s2378_s8 = scalar_lea.hbm %s3209_s0, 19200  ;;  %s2623_s5 = int_to_ptr.vmem [resolvable:$true] %s172_s5 }
  0x17   : > { %p2619_p13 = pnand %p2611_p11, %p2304_p12  ;;  %p2379_p0 = scmp.ne.s32.totalorder %s3209_s0, %s2378_s8 }
  0x18   : > { %p2385_p5 = scmp.lt.u32.totalorder %s2378_s8, %s3209_s0 }
  0x19   : > { %p2380_p1 = pneg %p2619_p13 }
  0x1b   : > { %p2381_p2 = pnand %p2380_p1, %p2379_p0 }
  0x1d   : > { %p2382_p3 = pneg %p2381_p2 }
  0x1f   : > { %p2387_p6 = pnand %p2385_p5, %p2382_p3 }
  0x21   : > { %2390 = shalt.err (!%p2387_p6)
}
  0x22   : > { %s2391_s19 = scalar_lea.vmem %s157_s29, 19200  ;;  %p2399_p8 = scmp.lt.s32.totalorder %s157_s29, %s157_s29 }
  0x23   : > { %p2392_p7 = scmp.ne.s32.totalorder %s157_s29, %s2391_s19  ;;  %p2400_p4 = scmp.lt.s32.totalorder %s2391_s19, %s2391_s19 }
  0x25   : > { %p2394_p9 = pnand %p2392_p7, %p2380_p1  ;;  %p2401_p11 = por %p2400_p4, %p2399_p8 }
  0x27   : > { %p2395_p12 = pneg %p2394_p9 }
  0x29   : > { %p2402_p10 = pnand %p2401_p11, %p2395_p12 }
  0x2b   : > { %2405 = shalt.err (!%p2402_p10)
}
  0x2c   : > { %s2524_s21 = smov 3200   ;;  %s2525_s23 = smov 200  }
  0x2d   : > { %2307 = dma.hbm_to_vmem [thread:$0]  (!%p2619_p13), %s3209_s0, 19200, %s157_s29, [#allocation3], %s2524_s21, %s2524_s21, %s2525_s23  }
  0x2e   : > { %s2406_s8 = scalar_lea.hbm %s3210_s1, 19200 }
  0x2f   : > { %p2407_p0 = scmp.ne.s32.totalorder %s3210_s1, %s2406_s8  ;;  %p2413_p10 = scmp.lt.u32.totalorder %s2406_s8, %s3210_s1 }
  0x31   : > { %p2409_p4 = pnand %p2407_p0, %p2380_p1 }
  0x33   : > { %p2410_p8 = pneg %p2409_p4 }
  0x35   : > { %p2415_p11 = pnand %p2413_p10, %p2410_p8 }
  0x37   : > { %2418 = shalt.err (!%p2415_p11)
}
  0x38   : > { %s2419_s29 = scalar_lea.vmem %s2623_s5, 19200  ;;  %p2427_p6 = scmp.lt.s32.totalorder %s2623_s5, %s2623_s5 }
  0x39   : > { %p2420_p2 = scmp.ne.s32.totalorder %s2623_s5, %s2419_s29  ;;  %p2428_p7 = scmp.lt.s32.totalorder %s2419_s29, %s2419_s29 }
  0x3b   : > { %p2422_p3 = pnand %p2420_p2, %p2380_p1  ;;  %p2429_p9 = por %p2428_p7, %p2427_p6 }
  0x3d   : > { %p2423_p5 = pneg %p2422_p3 }
  0x3f   : > { %p2430_p12 = pnand %p2429_p9, %p2423_p5 }
  0x41   : > { %2433 = shalt.err (!%p2430_p12)
}
  0x42   : > { %2310 = dma.hbm_to_vmem [thread:$0]  (!%p2619_p13), %s3210_s1, 19200, %s2623_s5, [#allocation6], %s2524_s21, %s2524_s21, %s2525_s23  }
  0x43   : > { %p3222_p0 = scmp.ne.s32.totalorder %s3219_s26, 0 }
  0x44   : > { %p3223_p4 = scmp.ne.s32.totalorder (!%p3222_p0), %s3220_s27, 0 }
  0x45   : > { %197 = sbr.rel (%p3222_p0) target bundleno = 582 (0x246), region = 32 }
  0x4c   : > { %2487 = dma.done.wait (%p3223_p4), [#allocation3], 19200  }
  0x4d   : > { %2489 = vsyncadd (%p3223_p4), [#allocation3], 4294948096 }
  0x4e   : > { %2491 = dma.done.wait (%p3223_p4), [#allocation6], 19200  }
  0x4f   : > { %2493 = vsyncadd (%p3223_p4), [#allocation6], 4294948096  ;;  %s225_s30 = smul.u32 9, %s2512_s15  ;;  %v2526_v0 = vmov 0   ;;  %v234_v1 = vld [vmem:[#allocation2 + $0x8] sm:$0xff]  ;;  %v259_v2 = vld [vmem:[#allocation2 + $0xd0] sm:$0xff] }
  0x50   : > { %840 = vmatprep.mubr.bf16.mxu1 %v2526_v0  ;;  %820 = vmatprep.mubr.bf16.mxu0 %v2526_v0  ;;  %v384_v3 = vld [vmem:[#allocation5 + $0x8] sm:$0xff]  ;;  %v409_v4 = vld [vmem:[#allocation5 + $0xd0] sm:$0xff]  ;;  %v258_v7 = vld [vmem:[#allocation2 + $0xc8] sm:$0xff]  ;;  %vm772_vm0 = vcmask 392192   ;;  %s222_s23 = sand.u32 1, %s2504_s13   ;;  %vm2528_vm1 = vmmov 0  }
  0x51   : > { %p226_p13 = scmp.lt.s32.totalorder %s225_s30, 35  ;;  %v534_v5 = vadd.f32 %v384_v3, %v234_v1  ;;  %v233_v6 = vld [vmem:[#allocation2] sm:$0xff]  ;;  %v559_v8 = vadd.f32 %v409_v4, %v259_v2  ;;  %v383_v9 = vld [vmem:[#allocation5] sm:$0xff]  ;;  %v408_v10 = vld [vmem:[#allocation5 + $0xc8] sm:$0xff]  ;;  %s2292_s4 = smul.u32 1800, %s222_s23  ;;  %vm1856_vm2 = vcmask 523264  }
  0x52   : > { %v284_v11 = vld [vmem:[#allocation2 + $0x198] sm:$0xff]  ;;  %v533_v12 = vadd.f32 %v383_v9, %v233_v6  ;;  %v558_v13 = vadd.f32 %v408_v10, %v258_v7  ;;  %v309_v14 = vld [vmem:[#allocation2 + $0x260] sm:$0xff]  ;;  %v434_v15 = vld [vmem:[#allocation5 + $0x198] sm:$0xff]  ;;  %s2319_s7 = smul.u32 28800, %s2512_s15  ;;  %s3163_s15 = scalar_lea.sflag [#allocation4], %s222_s23 }
  0x53   : > { %s3234_s30 = smov (!%p226_p13, %s225_s30), 35  ;;  %v459_v16 = vld [vmem:[#allocation5 + $0x260] sm:$0xff]  ;;  %v684_v17 = vpack.c.bf16 %v559_v8, %v534_v5  ;;  %v584_v18 = vadd.f32 %v434_v15, %v284_v11  ;;  %v308_v21 = vld [vmem:[#allocation2 + $0x258] sm:$0xff]  ;;  %v433_v22 = vld [vmem:[#allocation5 + $0x190] sm:$0xff]  ;;  %s2881_s6 = scalar_lea.vmem [#allocation7], %s2292_s4 }
  0x54   : > { %s2183_s26 = sshll.u32 %s3234_s30, 3  ;;  %v609_v19 = vadd.f32 %v459_v16, %v309_v14  ;;  %v283_v20 = vld [vmem:[#allocation2 + $0x190] sm:$0xff]  ;;  %v683_v23 = vpack.c.bf16 %v558_v13, %v533_v12  ;;  %v458_v24 = vld [vmem:[#allocation5 + $0x258] sm:$0xff]  ;;  %v484_v30 = vld [vmem:[#allocation5 + $0x328] sm:$0xff]  ;;  %s2075_s8 = sshll.u32 %s2881_s6, 4  ;;  %s3157_s8 = int_to_ptr.vmem [resolvable:$true] %s2075_s8 }
  0x55   : > { %v583_v25 = vadd.f32 %v433_v22, %v283_v20  ;;  %v334_v26 = vld [vmem:[#allocation2 + $0x328] sm:$0xff]  ;;  %v359_v27 = vld [vmem:[#allocation2 + $0x3f0] sm:$0xff]  ;;  %2286 = vmatprep.subr.bf16.mxu1 %v684_v17  ;;  %v608_v29 = vadd.f32 %v458_v24, %v308_v21  ;;  %788 = vmatprep.subr.bf16.mxu0 %v684_v17  ;;  %v509_v31 = vld [vmem:[#allocation5 + $0x3f0] sm:$0xff]  ;;  %s2691_s21 = scalar_lea.vmem %s3211_s2, %s2183_s26  ;;  %s3155_s11 = scalar_lea.hbm %s3212_s3, %s2319_s7 }
  0x56   : > { %v709_v28 = vpack.c.bf16 %v609_v19, %v584_v18  ;;  %v333_v32 = vld [vmem:[#allocation2 + $0x320] sm:$0xff]  ;;  %2289 = vmatpush1.bf16.msra.mxu1 %v683_v23  ;;  %789 = vmatpush1.bf16.msra.mxu0 %v683_v23  ;;  %v634_v33 = vadd.f32 %v484_v30, %v334_v26  ;;  %v659_v34 = vadd.f32 %v509_v31, %v359_v27  ;;  %v358_v35 = vld [vmem:[#allocation2 + $0x3e8] sm:$0xff]  ;;  %v483_v36 = vld [vmem:[#allocation5 + $0x320] sm:$0xff]  ;;  %s2434_s18 = scalar_lea.vmem %s3157_s8, 28800  ;;  %p3224_p8 = scmp.ne.s32.totalorder %s3217_s22, 0 }
  0x57   : > { %v508_v37 = vld [vmem:[#allocation5 + $0x3e8] sm:$0xff]  ;;  %v708_v38 = vpack.c.bf16 %v608_v29, %v583_v25  ;;  %v633_v39 = vadd.f32 %v483_v36, %v333_v32  ;;  %v762_v43 = vld [vmem:[%s2691_s21 + $0x20] sm:$0xff]  ;;  %v763_v44 = vld [vmem:[%s2691_s21 + $0x28] sm:$0xff]  ;;  %p2435_p1 = scmp.ne.s32.totalorder %s3157_s8, %s2434_s18  ;;  %s2529_s29 = smov [#allocation7]  }
  0x58   : > { %2287 = vmatprep.subr.bf16.mxu1 %v709_v28  ;;  %v658_v40 = vadd.f32 %v508_v37, %v358_v35  ;;  %790 = vmatprep.subr.bf16.mxu0 %v709_v28  ;;  %v236_v41 = vld [vmem:[#allocation2 + $0x18] sm:$0xff]  ;;  %v734_v42 = vpack.c.bf16 %v659_v34, %v634_v33  ;;  %v261_v45 = vld [vmem:[#allocation2 + $0xe0] sm:$0xff]  ;;  %v386_v46 = vld [vmem:[#allocation5 + $0x18] sm:$0xff]  ;;  %v2697_v1 = vpack.c.bf16 %v763_v44, %v762_v43  ;;  %s2438_s19 = sshll.u32 %s2529_s29, 4  ;;  %s2439_s19 = int_to_ptr.vmem [resolvable:$false] %s2438_s19 }
  0x59   : > { %v411_v47 = vld [vmem:[#allocation5 + $0xe0] sm:$0xff]  ;;  %v536_v48 = vadd.f32 %v386_v46, %v236_v41  ;;  %v260_v51 = vld [vmem:[#allocation2 + $0xd8] sm:$0xff]  ;;  %v385_v52 = vld [vmem:[#allocation5 + $0x10] sm:$0xff]  ;;  %p2436_p10 = pnand %p2435_p1, %p3224_p8  ;;  %s2440_s28 = scalar_lea.vmem %s2439_s19, 57600 }
  0x5a   : > { %v561_v49 = vadd.f32 %v411_v47, %v261_v45  ;;  %v235_v50 = vld [vmem:[#allocation2 + $0x10] sm:$0xff]  ;;  %2290 = vmatpush1.bf16.msra.mxu1 %v708_v38  ;;  %v733_v53 = vpack.c.bf16 %v658_v40, %v633_v39  ;;  %791 = vmatpush1.bf16.msra.mxu0 %v708_v38  ;;  %v410_v54 = vld [vmem:[#allocation5 + $0xd8] sm:$0xff]  ;;  %v758_v56 = vld [vmem:[%s2691_s21] sm:$0xff]  ;;  %p2441_p2 = scmp.lt.s32.totalorder %s3157_s8, %s2439_s19  ;;  %p2442_p3 = scmp.lt.s32.totalorder %s2440_s28, %s2434_s18 }
  0x5b   : > { %v535_v55 = vadd.f32 %v385_v52, %v235_v50  ;;  %v759_v57 = vld [vmem:[%s2691_s21 + $0x8] sm:$0xff]  ;;  %2288 = vmatprep.subr.bf16.mxu1 %v734_v42  ;;  %v560_v59 = vadd.f32 %v410_v54, %v260_v51  ;;  %792 = vmatprep.subr.bf16.mxu0 %v734_v42  ;;  %v311_v61 = vld [vmem:[#allocation2 + $0x270] sm:$0xff]  ;;  %v436_v62 = vld [vmem:[#allocation5 + $0x1a8] sm:$0xff]  ;;  %p2437_p11 = pneg %p2436_p10 }
  0x5c   : > { %v686_v58 = vpack.c.bf16 %v561_v49, %v536_v48  ;;  %v286_v60 = vld [vmem:[#allocation2 + $0x1a8] sm:$0xff]  ;;  %v461_v63 = vld [vmem:[#allocation5 + $0x270] sm:$0xff]  ;;  %v2699_v2 = vpack.c.bf16 %v759_v57, %v758_v56  ;;  %v263_v6 = vld [vmem:[#allocation2 + $0xf0] sm:$0xff]  ;;  %p2443_p5 = por %p2442_p3, %p2441_p2 }
  0x5d   : > { %v586_v3 = vadd.f32 %v436_v62, %v286_v60  ;;  %v611_v4 = vadd.f32 %v461_v63, %v311_v61  ;;  %v238_v5 = vld [vmem:[#allocation2 + $0x28] sm:$0xff]  ;;  %v388_v7 = vld [vmem:[#allocation5 + $0x28] sm:$0xff]  ;;  %v685_v8 = vpack.c.bf16 %v560_v59, %v535_v55  ;;  %v413_v9 = vld [vmem:[#allocation5 + $0xf0] sm:$0xff] }
  0x5e   : > { %2291 = vmatpush1.bf16.msra.mxu1 %v733_v53  ;;  %793 = vmatpush1.bf16.msra.mxu0 %v733_v53  ;;  %v538_v10 = vadd.f32 %v388_v7, %v238_v5  ;;  %v285_v11 = vld [vmem:[#allocation2 + $0x1a0] sm:$0xff]  ;;  %v310_v12 = vld [vmem:[#allocation2 + $0x268] sm:$0xff]  ;;  %v563_v14 = vadd.f32 %v413_v9, %v263_v6  ;;  %v435_v15 = vld [vmem:[#allocation5 + $0x1a0] sm:$0xff]  ;;  %p2444_p6 = pnand %p2443_p5, %p2437_p11 }
  0x5f   : > { %869 = vmatprep.subr.bf16.mxu1 %v686_v58  ;;  %v711_v13 = vpack.c.bf16 %v611_v4, %v586_v3  ;;  %v460_v16 = vld [vmem:[#allocation5 + $0x268] sm:$0xff]  ;;  %v237_v17 = vld [vmem:[#allocation2 + $0x20] sm:$0xff]  ;;  %v764_v18 = vld [vmem:[%s2691_s21 + $0x30] sm:$0xff]  ;;  %v585_v20 = vadd.f32 %v435_v15, %v285_v11 }
  0x60   : > { %v765_v19 = vld [vmem:[%s2691_s21 + $0x38] sm:$0xff]  ;;  %v610_v21 = vadd.f32 %v460_v16, %v310_v12  ;;  %v262_v22 = vld [vmem:[#allocation2 + $0xe8] sm:$0xff]  ;;  %v387_v23 = vld [vmem:[#allocation5 + $0x20] sm:$0xff]  ;;  %v688_v25 = vpack.c.bf16 %v563_v14, %v538_v10 }
  0x61   : > { %v412_v24 = vld [vmem:[#allocation5 + $0xe8] sm:$0xff]  ;;  %2186 = vmatmul.mubr.msk.bf16.vlgmr.msra.gmra.mrb[0].mxu1 %vm772_vm0, %v2697_v1  ;;  %2184 = vmatmul.mubr.msk.bf16.vlgmr.msra.gmra.mrb[0].mxu0 %vm772_vm0, %v2699_v2  ;;  %v537_v26 = vadd.f32 %v387_v23, %v237_v17  ;;  %v760_v28 = vld [vmem:[%s2691_s21 + $0x10] sm:$0xff]  ;;  %v313_v32 = vld [vmem:[#allocation2 + $0x280] sm:$0xff]  ;;  %v2711_v44 = vpack.c.bf16 %v765_v19, %v764_v18 }
  0x62   : > { %v562_v27 = vadd.f32 %v412_v24, %v262_v22  ;;  %v761_v29 = vld [vmem:[%s2691_s21 + $0x18] sm:$0xff]  ;;  %870 = vmatpush1.bf16.msra.mxu1 %v685_v8  ;;  %850 = vmatprep.mubr.bf16.mxu1 %v2526_v0  ;;  %v710_v31 = vpack.c.bf16 %v610_v21, %v585_v20  ;;  %v438_v33 = vld [vmem:[#allocation5 + $0x1b8] sm:$0xff]  ;;  %v463_v34 = vld [vmem:[#allocation5 + $0x280] sm:$0xff] }
  0x63   : > { %v288_v30 = vld [vmem:[#allocation2 + $0x1b8] sm:$0xff]  ;;  %871 = vmatprep.subr.bf16.mxu1 %v711_v13  ;;  %950 = vmatprep.subr.bf16.mxu0 %v688_v25  ;;  %v613_v37 = vadd.f32 %v463_v34, %v313_v32  ;;  %v287_v38 = vld [vmem:[#allocation2 + $0x1b0] sm:$0xff]  ;;  %v437_v40 = vld [vmem:[#allocation5 + $0x1b0] sm:$0xff]  ;;  %v2713_v45 = vpack.c.bf16 %v761_v29, %v760_v28 }
  0x64   : > { %v687_v35 = vpack.c.bf16 %v562_v27, %v537_v26  ;;  %v588_v36 = vadd.f32 %v438_v33, %v288_v30  ;;  %v312_v39 = vld [vmem:[#allocation2 + $0x278] sm:$0xff]  ;;  %830 = vmatprep.mubr.bf16.mxu0 %v2526_v0  ;;  %v462_v41 = vld [vmem:[#allocation5 + $0x278] sm:$0xff]  ;;  %v587_v42 = vadd.f32 %v437_v40, %v287_v38  ;;  %v361_v48 = vld [vmem:[#allocation2 + $0x400] sm:$0xff] }
  0x65   : > { %v336_v43 = vld [vmem:[#allocation2 + $0x338] sm:$0xff]  ;;  %v612_v47 = vadd.f32 %v462_v41, %v312_v39  ;;  %v486_v49 = vld [vmem:[#allocation5 + $0x338] sm:$0xff]  ;;  %v511_v50 = vld [vmem:[#allocation5 + $0x400] sm:$0xff] }
  0x66   : > { %951 = vmatpush1.bf16.msra.mxu0 %v687_v35  ;;  %v713_v46 = vpack.c.bf16 %v613_v37, %v588_v36  ;;  %872 = vmatpush1.bf16.msra.mxu1 %v710_v31  ;;  %v636_v51 = vadd.f32 %v486_v49, %v336_v43  ;;  %v661_v52 = vadd.f32 %v511_v50, %v361_v48  ;;  %v335_v53 = vld [vmem:[#allocation2 + $0x330] sm:$0xff]  ;;  %v360_v54 = vld [vmem:[#allocation2 + $0x3f8] sm:$0xff]  ;;  %v485_v55 = vld [vmem:[#allocation5 + $0x330] sm:$0xff] }
  0x67   : > { %v712_v56 = vpack.c.bf16 %v612_v47, %v587_v42  ;;  %v510_v57 = vld [vmem:[#allocation5 + $0x3f8] sm:$0xff]  ;;  %v635_v58 = vadd.f32 %v485_v55, %v335_v53  ;;  %v363_v60 = vld [vmem:[#allocation2 + $0x410] sm:$0xff]  ;;  %v766_v61 = vld [vmem:[%s2691_s21 + $0x40] sm:$0xff] }
  0x68   : > { %952 = vmatprep.subr.bf16.mxu0 %v713_v46  ;;  %v338_v59 = vld [vmem:[#allocation2 + $0x348] sm:$0xff]  ;;  %v736_v62 = vpack.c.bf16 %v661_v52, %v636_v51  ;;  %v660_v63 = vadd.f32 %v510_v57, %v360_v54  ;;  %v488_v3 = vld [vmem:[#allocation5 + $0x348] sm:$0xff]  ;;  %v513_v4 = vld [vmem:[#allocation5 + $0x410] sm:$0xff]  ;;  %v2722_v27 = vpack.c.bf16 %v766_v61, %v766_v61 }
  0x69   : > { %v337_v5 = vld [vmem:[#allocation2 + $0x340] sm:$0xff]  ;;  %2187 = vmatmul.mubr.msk.bf16.gmra.mrb[4].mxu1 %vm772_vm0, %v2711_v44  ;;  %2185 = vmatmul.mubr.msk.bf16.gmra.mrb[4].mxu0 %vm772_vm0, %v2713_v45  ;;  %v638_v6 = vadd.f32 %v488_v3, %v338_v59  ;;  %v663_v7 = vadd.f32 %v513_v4, %v363_v60  ;;  %v362_v8 = vld [vmem:[#allocation2 + $0x408] sm:$0xff]  ;;  %v487_v9 = vld [vmem:[#allocation5 + $0x340] sm:$0xff] }
  0x6a   : > { %v512_v10 = vld [vmem:[#allocation5 + $0x408] sm:$0xff]  ;;  %860 = vmatprep.mubr.bf16.mxu1 %v2526_v0  ;;  %953 = vmatpush1.bf16.msra.mxu0 %v712_v56  ;;  %v735_v11 = vpack.c.bf16 %v660_v63, %v635_v58  ;;  %v637_v12 = vadd.f32 %v487_v9, %v337_v5  ;;  %v265_v15 = vld [vmem:[#allocation2 + $0x100] sm:$0xff]  ;;  %v390_v16 = vld [vmem:[#allocation5 + $0x38] sm:$0xff] }
  0x6b   : > { %v662_v13 = vadd.f32 %v512_v10, %v362_v8  ;;  %v240_v14 = vld [vmem:[#allocation2 + $0x38] sm:$0xff]  ;;  %873 = vmatprep.subr.bf16.mxu1 %v736_v62  ;;  %v738_v17 = vpack.c.bf16 %v663_v7, %v638_v6  ;;  %982 = vmatprep.mubr.bf16.mxu0 %v2526_v0  ;;  %v415_v18 = vld [vmem:[#allocation5 + $0x100] sm:$0xff]  ;;  %v242_v20 = vld [vmem:[#allocation2 + $0x48] sm:$0xff] }
  0x6c   : > { %v540_v19 = vadd.f32 %v390_v16, %v240_v14  ;;  %v267_v21 = vld [vmem:[#allocation2 + $0x110] sm:$0xff]  ;;  %874 = vmatpush1.bf16.msra.mxu1 %v735_v11  ;;  %v565_v23 = vadd.f32 %v415_v18, %v265_v15  ;;  %v392_v24 = vld [vmem:[#allocation5 + $0x48] sm:$0xff]  ;;  %v417_v25 = vld [vmem:[#allocation5 + $0x110] sm:$0xff] }
  0x6d   : > { %v737_v22 = vpack.c.bf16 %v662_v13, %v637_v12  ;;  %v239_v26 = vld [vmem:[#allocation2 + $0x30] sm:$0xff]  ;;  %954 = vmatprep.subr.bf16.mxu0 %v738_v17  ;;  %v542_v28 = vadd.f32 %v392_v24, %v242_v20  ;;  %v567_v29 = vadd.f32 %v417_v25, %v267_v21  ;;  %v264_v30 = vld [vmem:[#allocation2 + $0xf8] sm:$0xff]  ;;  %v389_v31 = vld [vmem:[#allocation5 + $0x30] sm:$0xff] }
  0x6e   : > { %v414_v32 = vld [vmem:[#allocation5 + $0xf8] sm:$0xff]  ;;  %v690_v33 = vpack.c.bf16 %v565_v23, %v540_v19  ;;  %v241_v34 = vld [vmem:[#allocation2 + $0x40] sm:$0xff]  ;;  %v391_v36 = vld [vmem:[#allocation5 + $0x40] sm:$0xff]  ;;  %v539_v48 = vadd.f32 %v389_v31, %v239_v26 }
  0x6f   : > { %955 = vmatpush1.bf16.msra.mxu0 %v737_v22  ;;  %v266_v35 = vld [vmem:[#allocation2 + $0x108] sm:$0xff]  ;;  %v692_v37 = vpack.c.bf16 %v567_v29, %v542_v28  ;;  %v416_v38 = vld [vmem:[#allocation5 + $0x108] sm:$0xff]  ;;  %v541_v39 = vadd.f32 %v391_v36, %v241_v34  ;;  %v315_v41 = vld [vmem:[#allocation2 + $0x290] sm:$0xff]  ;;  %v564_v49 = vadd.f32 %v414_v32, %v264_v30 }
  0x70   : > { %v290_v40 = vld [vmem:[#allocation2 + $0x1c8] sm:$0xff]  ;;  %1031 = vmatprep.subr.bf16.mxu1 %v690_v33  ;;  %v566_v42 = vadd.f32 %v416_v38, %v266_v35  ;;  %v440_v43 = vld [vmem:[#allocation5 + $0x1c8] sm:$0xff]  ;;  %v465_v46 = vld [vmem:[#allocation5 + $0x290] sm:$0xff] }
  0x71   : > { %v292_v47 = vld [vmem:[#allocation2 + $0x1d8] sm:$0xff]  ;;  %2188 = vmatmul.mubr.msk.bf16.gmra.mrb[8].mxu1 %vm772_vm0, %v2722_v27  ;;  %v317_v50 = vld [vmem:[#allocation2 + $0x2a0] sm:$0xff]  ;;  %v442_v51 = vld [vmem:[#allocation5 + $0x1d8] sm:$0xff]  ;;  %1112 = vmatprep.subr.bf16.mxu0 %v692_v37  ;;  %v590_v59 = vadd.f32 %v440_v43, %v290_v40  ;;  %v615_v60 = vadd.f32 %v465_v46, %v315_v41  ;;  %v689_v14 = vpack.c.bf16 %v564_v49, %v539_v48 }
  0x72   : > { %2194 = vmatmul.mubr.msk.bf16.vlgmr.msra.gmra.mrb[8].mxu0 %vm772_vm0, %v2699_v2  ;;  %v467_v52 = vld [vmem:[#allocation5 + $0x2a0] sm:$0xff]  ;;  %901 = vmatprep.mubr.bf16.mxu1 %v2526_v0  ;;  %v691_v53 = vpack.c.bf16 %v566_v42, %v541_v39  ;;  %v592_v54 = vadd.f32 %v442_v51, %v292_v47  ;;  %v289_v56 = vld [vmem:[#allocation2 + $0x1c0] sm:$0xff]  ;;  %v314_v57 = vld [vmem:[#allocation2 + $0x288] sm:$0xff] }
  0x73   : > { %v617_v55 = vadd.f32 %v467_v52, %v317_v50  ;;  %v439_v58 = vld [vmem:[#allocation5 + $0x1c0] sm:$0xff]  ;;  %992 = vmatprep.mubr.bf16.mxu0 %v2526_v0  ;;  %v464_v61 = vld [vmem:[#allocation5 + $0x288] sm:$0xff]  ;;  %v441_v4 = vld [vmem:[#allocation5 + $0x1d0] sm:$0xff]  ;;  %v715_v18 = vpack.c.bf16 %v615_v60, %v590_v59 }
  0x74   : > { %v291_v62 = vld [vmem:[#allocation2 + $0x1d0] sm:$0xff]  ;;  %v316_v63 = vld [vmem:[#allocation2 + $0x298] sm:$0xff]  ;;  %1113 = vmatpush1.bf16.msra.mxu0 %v691_v53  ;;  %v466_v5 = vld [vmem:[#allocation5 + $0x298] sm:$0xff]  ;;  %v589_v7 = vadd.f32 %v439_v58, %v289_v56  ;;  %v614_v8 = vadd.f32 %v464_v61, %v314_v57 }
  0x75   : > { %v717_v3 = vpack.c.bf16 %v617_v55, %v592_v54  ;;  %v340_v6 = vld [vmem:[#allocation2 + $0x358] sm:$0xff]  ;;  %v591_v9 = vadd.f32 %v441_v4, %v291_v62  ;;  %v616_v10 = vadd.f32 %v466_v5, %v316_v63  ;;  %v365_v11 = vld [vmem:[#allocation2 + $0x420] sm:$0xff]  ;;  %v490_v12 = vld [vmem:[#allocation5 + $0x358] sm:$0xff] }
  0x76   : > { %v515_v13 = vld [vmem:[#allocation5 + $0x420] sm:$0xff]  ;;  %v342_v15 = vld [vmem:[#allocation2 + $0x368] sm:$0xff]  ;;  %v492_v17 = vld [vmem:[#allocation5 + $0x368] sm:$0xff]  ;;  %v640_v19 = vadd.f32 %v490_v12, %v340_v6  ;;  %v714_v31 = vpack.c.bf16 %v614_v8, %v589_v7 }
  0x77   : > { %1114 = vmatprep.subr.bf16.mxu0 %v717_v3  ;;  %v367_v16 = vld [vmem:[#allocation2 + $0x430] sm:$0xff]  ;;  %v665_v20 = vadd.f32 %v515_v13, %v365_v11  ;;  %v517_v21 = vld [vmem:[#allocation5 + $0x430] sm:$0xff]  ;;  %v642_v22 = vadd.f32 %v492_v17, %v342_v15  ;;  %v364_v24 = vld [vmem:[#allocation2 + $0x418] sm:$0xff]  ;;  %v716_v25 = vpack.c.bf16 %v616_v10, %v591_v9 }
  0x78   : > { %v339_v23 = vld [vmem:[#allocation2 + $0x350] sm:$0xff]  ;;  %v667_v26 = vadd.f32 %v517_v21, %v367_v16  ;;  %v489_v28 = vld [vmem:[#allocation5 + $0x350] sm:$0xff]  ;;  %v514_v29 = vld [vmem:[#allocation5 + $0x418] sm:$0xff] }
  0x79   : > { %v341_v30 = vld [vmem:[#allocation2 + $0x360] sm:$0xff]  ;;  %2189 = vmatmul.mubr.msk.bf16.vlgmr.msra.gmra.mrb[12].mxu1 %vm772_vm0, %v2699_v2  ;;  %v366_v32 = vld [vmem:[#allocation2 + $0x428] sm:$0xff]  ;;  %v491_v33 = vld [vmem:[#allocation5 + $0x360] sm:$0xff]  ;;  %v740_v41 = vpack.c.bf16 %v665_v20, %v640_v19  ;;  %v639_v42 = vadd.f32 %v489_v28, %v339_v23  ;;  %v664_v43 = vadd.f32 %v514_v29, %v364_v24  ;;  %1115 = vmatpush1.bf16.msra.mxu0 %v716_v25 }
  0x7a   : > { %2195 = vmatmul.mubr.msk.bf16.gmra.mrb[12].mxu0 %vm772_vm0, %v2713_v45  ;;  %v516_v34 = vld [vmem:[#allocation5 + $0x428] sm:$0xff]  ;;  %1032 = vmatpush1.bf16.msra.mxu1 %v689_v14  ;;  %v742_v35 = vpack.c.bf16 %v667_v26, %v642_v22  ;;  %v641_v36 = vadd.f32 %v491_v33, %v341_v30  ;;  %v269_v39 = vld [vmem:[#allocation2 + $0x120] sm:$0xff]  ;;  %v394_v40 = vld [vmem:[#allocation5 + $0x58] sm:$0xff] }
  0x7b   : > { %911 = vmatprep.mubr.bf16.mxu1 %v2526_v0  ;;  %v666_v37 = vadd.f32 %v516_v34, %v366_v32  ;;  %v244_v38 = vld [vmem:[#allocation2 + $0x58] sm:$0xff]  ;;  %1002 = vmatprep.mubr.bf16.mxu0 %v2526_v0  ;;  %v419_v46 = vld [vmem:[#allocation5 + $0x120] sm:$0xff]  ;;  %v246_v47 = vld [vmem:[#allocation2 + $0x68] sm:$0xff]  ;;  %v739_v56 = vpack.c.bf16 %v664_v43, %v639_v42 }
  0x7c   : > { %1033 = vmatprep.subr.bf16.mxu1 %v715_v18  ;;  %v271_v48 = vld [vmem:[#allocation2 + $0x130] sm:$0xff]  ;;  %v544_v50 = vadd.f32 %v394_v40, %v244_v38  ;;  %v569_v51 = vadd.f32 %v419_v46, %v269_v39  ;;  %v396_v52 = vld [vmem:[#allocation5 + $0x68] sm:$0xff]  ;;  %v421_v53 = vld [vmem:[#allocation5 + $0x130] sm:$0xff]  ;;  %1116 = vmatprep.subr.bf16.mxu0 %v742_v35 }
  0x7d   : > { %v741_v49 = vpack.c.bf16 %v666_v37, %v641_v36  ;;  %v546_v54 = vadd.f32 %v396_v52, %v246_v47  ;;  %v571_v55 = vadd.f32 %v421_v53, %v271_v48  ;;  %v245_v59 = vld [vmem:[#allocation2 + $0x60] sm:$0xff]  ;;  %v270_v60 = vld [vmem:[#allocation2 + $0x128] sm:$0xff]  ;;  %v395_v61 = vld [vmem:[#allocation5 + $0x60] sm:$0xff] }
  0x7e   : > { %1034 = vmatpush1.bf16.msra.mxu1 %v714_v31  ;;  %v694_v58 = vpack.c.bf16 %v569_v51, %v544_v50  ;;  %v420_v62 = vld [vmem:[#allocation5 + $0x128] sm:$0xff]  ;;  %v321_v3 = vld [vmem:[#allocation2 + $0x2c0] sm:$0xff]  ;;  %v446_v4 = vld [vmem:[#allocation5 + $0x1f8] sm:$0xff]  ;;  %v545_v6 = vadd.f32 %v395_v61, %v245_v59 }
  0x7f   : > { %1035 = vmatprep.subr.bf16.mxu1 %v740_v41  ;;  %v696_v57 = vpack.c.bf16 %v571_v55, %v546_v54  ;;  %1117 = vmatpush1.bf16.msra.mxu0 %v741_v49  ;;  %v296_v63 = vld [vmem:[#allocation2 + $0x1f8] sm:$0xff]  ;;  %v471_v5 = vld [vmem:[#allocation5 + $0x2c0] sm:$0xff]  ;;  %v570_v7 = vadd.f32 %v420_v62, %v270_v60  ;;  %v445_v12 = vld [vmem:[#allocation5 + $0x1f0] sm:$0xff] }
  0x80   : > { %v295_v8 = vld [vmem:[#allocation2 + $0x1f0] sm:$0xff]  ;;  %v320_v9 = vld [vmem:[#allocation2 + $0x2b8] sm:$0xff]  ;;  %v596_v10 = vadd.f32 %v446_v4, %v296_v63  ;;  %v621_v11 = vadd.f32 %v471_v5, %v321_v3  ;;  %v470_v13 = vld [vmem:[#allocation5 + $0x2b8] sm:$0xff] }
  0x81   : > { %2190 = vmatmul.mubr.msk.bf16.gmra.mrb[16].mxu1 %vm772_vm0, %v2713_v45  ;;  %1274 = vmatprep.subr.bf16.mxu0 %v696_v57  ;;  %v346_v14 = vld [vmem:[#allocation2 + $0x388] sm:$0xff]  ;;  %v371_v15 = vld [vmem:[#allocation2 + $0x450] sm:$0xff]  ;;  %v496_v16 = vld [vmem:[#allocation5 + $0x388] sm:$0xff]  ;;  %v695_v22 = vpack.c.bf16 %v570_v7, %v545_v6  ;;  %v595_v23 = vadd.f32 %v445_v12, %v295_v8  ;;  %v620_v24 = vadd.f32 %v470_v13, %v320_v9 }
  0x82   : > { %2196 = vmatmul.mubr.msk.bf16.gmra.mrb[16].mxu0 %vm772_vm0, %v2697_v1  ;;  %921 = vmatprep.mubr.bf16.mxu1 %v2526_v0  ;;  %v521_v17 = vld [vmem:[#allocation5 + $0x450] sm:$0xff]  ;;  %v243_v18 = vld [vmem:[#allocation2 + $0x50] sm:$0xff]  ;;  %v268_v19 = vld [vmem:[#allocation2 + $0x118] sm:$0xff]  ;;  %v721_v29 = vpack.c.bf16 %v621_v11, %v596_v10  ;;  %v646_v30 = vadd.f32 %v496_v16, %v346_v14 }
  0x83   : > { %1012 = vmatprep.mubr.bf16.mxu0 %v2526_v0  ;;  %1036 = vmatpush1.bf16.msra.mxu1 %v739_v56  ;;  %v393_v20 = vld [vmem:[#allocation5 + $0x50] sm:$0xff]  ;;  %v418_v21 = vld [vmem:[#allocation5 + $0x118] sm:$0xff]  ;;  %v319_v26 = vld [vmem:[#allocation2 + $0x2b0] sm:$0xff]  ;;  %v671_v31 = vadd.f32 %v521_v17, %v371_v15  ;;  %v720_v42 = vpack.c.bf16 %v620_v24, %v595_v23 }
  0x84   : > { %1193 = vmatprep.subr.bf16.mxu1 %v694_v58  ;;  %v294_v25 = vld [vmem:[#allocation2 + $0x1e8] sm:$0xff]  ;;  %v444_v28 = vld [vmem:[#allocation5 + $0x1e8] sm:$0xff]  ;;  %v469_v32 = vld [vmem:[#allocation5 + $0x2b0] sm:$0xff]  ;;  %v543_v40 = vadd.f32 %v393_v20, %v243_v18  ;;  %v568_v41 = vadd.f32 %v418_v21, %v268_v19 }
  0x85   : > { %v345_v33 = vld [vmem:[#allocation2 + $0x380] sm:$0xff]  ;;  %v370_v34 = vld [vmem:[#allocation2 + $0x448] sm:$0xff]  ;;  %v495_v37 = vld [vmem:[#allocation5 + $0x380] sm:$0xff]  ;;  %v594_v48 = vadd.f32 %v444_v28, %v294_v25  ;;  %v619_v49 = vadd.f32 %v469_v32, %v319_v26  ;;  %v746_v53 = vpack.c.bf16 %v671_v31, %v646_v30 }
  0x86   : > { %v293_v35 = vld [vmem:[#allocation2 + $0x1e0] sm:$0xff]  ;;  %v318_v36 = vld [vmem:[#allocation2 + $0x2a8] sm:$0xff]  ;;  %v520_v38 = vld [vmem:[#allocation5 + $0x448] sm:$0xff]  ;;  %v645_v57 = vadd.f32 %v495_v37, %v345_v33  ;;  %v693_v61 = vpack.c.bf16 %v568_v41, %v543_v40 }
  0x87   : > { %v250_v39 = vld [vmem:[#allocation2 + $0x88] sm:$0xff]  ;;  %v275_v43 = vld [vmem:[#allocation2 + $0x150] sm:$0xff]  ;;  %v400_v46 = vld [vmem:[#allocation5 + $0x88] sm:$0xff]  ;;  %v670_v58 = vadd.f32 %v520_v38, %v370_v34  ;;  %v719_v3 = vpack.c.bf16 %v619_v49, %v594_v48 }
  0x88   : > { %v425_v47 = vld [vmem:[#allocation5 + $0x150] sm:$0xff]  ;;  %v443_v50 = vld [vmem:[#allocation5 + $0x1e0] sm:$0xff]  ;;  %v468_v51 = vld [vmem:[#allocation5 + $0x2a8] sm:$0xff]  ;;  %v550_v59 = vadd.f32 %v400_v46, %v250_v39 }
  0x89   : > { %2191 = vmatmul.mubr.msk.bf16.gmra.mrb[20].mxu1 %vm772_vm0, %v2697_v1  ;;  %v344_v52 = vld [vmem:[#allocation2 + $0x378] sm:$0xff]  ;;  %v369_v54 = vld [vmem:[#allocation2 + $0x440] sm:$0xff]  ;;  %v494_v55 = vld [vmem:[#allocation5 + $0x378] sm:$0xff]  ;;  %v575_v60 = vadd.f32 %v425_v47, %v275_v43  ;;  %v593_v62 = vadd.f32 %v443_v50, %v293_v35  ;;  %v618_v63 = vadd.f32 %v468_v51, %v318_v36  ;;  %v745_v10 = vpack.c.bf16 %v670_v58, %v645_v57 }
  0x8a   : > { %2197 = vmatmul.mubr.msk.bf16.gmra.mrb[20].mxu0 %vm772_vm0, %v2711_v44  ;;  %931 = vmatprep.mubr.bf16.mxu1 %v2526_v0  ;;  %v519_v56 = vld [vmem:[#allocation5 + $0x440] sm:$0xff]  ;;  %v644_v4 = vadd.f32 %v494_v55, %v344_v52  ;;  %v368_v7 = vld [vmem:[#allocation2 + $0x438] sm:$0xff]  ;;  %v493_v8 = vld [vmem:[#allocation5 + $0x370] sm:$0xff] }
  0x8b   : > { %1022 = vmatprep.mubr.bf16.mxu0 %v2526_v0  ;;  %v669_v5 = vadd.f32 %v519_v56, %v369_v54  ;;  %v343_v6 = vld [vmem:[#allocation2 + $0x370] sm:$0xff]  ;;  %v518_v9 = vld [vmem:[#allocation5 + $0x438] sm:$0xff]  ;;  %v248_v11 = vld [vmem:[#allocation2 + $0x78] sm:$0xff]  ;;  %v700_v15 = vpack.c.bf16 %v575_v60, %v550_v59  ;;  %v718_v16 = vpack.c.bf16 %v618_v63, %v593_v62 }
  0x8c   : > { %v273_v12 = vld [vmem:[#allocation2 + $0x140] sm:$0xff]  ;;  %v398_v13 = vld [vmem:[#allocation5 + $0x78] sm:$0xff]  ;;  %v423_v14 = vld [vmem:[#allocation5 + $0x140] sm:$0xff]  ;;  %v643_v18 = vadd.f32 %v493_v8, %v343_v6  ;;  %v668_v19 = vadd.f32 %v518_v9, %v368_v7 }
  0x8d   : > { %v744_v17 = vpack.c.bf16 %v669_v5, %v644_v4  ;;  %v548_v20 = vadd.f32 %v398_v13, %v248_v11  ;;  %v573_v21 = vadd.f32 %v423_v14, %v273_v12  ;;  %v249_v24 = vld [vmem:[#allocation2 + $0x80] sm:$0xff]  ;;  %v274_v25 = vld [vmem:[#allocation2 + $0x148] sm:$0xff]  ;;  %v399_v26 = vld [vmem:[#allocation5 + $0x80] sm:$0xff] }
  0x8e   : > { %v424_v28 = vld [vmem:[#allocation5 + $0x148] sm:$0xff]  ;;  %v325_v30 = vld [vmem:[#allocation2 + $0x2e0] sm:$0xff]  ;;  %v450_v31 = vld [vmem:[#allocation5 + $0x218] sm:$0xff]  ;;  %v549_v33 = vadd.f32 %v399_v26, %v249_v24 }
  0x8f   : > { %v698_v23 = vpack.c.bf16 %v573_v21, %v548_v20  ;;  %v475_v32 = vld [vmem:[#allocation5 + $0x2e0] sm:$0xff]  ;;  %v574_v34 = vadd.f32 %v424_v28, %v274_v25  ;;  %v324_v36 = vld [vmem:[#allocation2 + $0x2d8] sm:$0xff]  ;;  %v449_v39 = vld [vmem:[#allocation5 + $0x210] sm:$0xff] }
  0x90   : > { %v299_v35 = vld [vmem:[#allocation2 + $0x210] sm:$0xff]  ;;  %v625_v38 = vadd.f32 %v475_v32, %v325_v30  ;;  %v474_v40 = vld [vmem:[#allocation5 + $0x2d8] sm:$0xff]  ;;  %v500_v43 = vld [vmem:[#allocation5 + $0x3a8] sm:$0xff] }
  0x91   : > { %2192 = vmatmul.mubr.msk.bf16.gmra.mrb[24].mxu1 %vm772_vm0, %v2711_v44  ;;  %v350_v41 = vld [vmem:[#allocation2 + $0x3a8] sm:$0xff]  ;;  %v525_v46 = vld [vmem:[#allocation5 + $0x470] sm:$0xff]  ;;  %v247_v47 = vld [vmem:[#allocation2 + $0x70] sm:$0xff]  ;;  %v699_v51 = vpack.c.bf16 %v574_v34, %v549_v33  ;;  %v599_v52 = vadd.f32 %v449_v39, %v299_v35 }
  0x92   : > { %2198 = vmatmul.mubr.msk.bf16.gmra.mrb[24].mxu0 %vm772_vm0, %v2722_v27  ;;  %941 = vmatprep.mubr.bf16.mxu1 %v2526_v0  ;;  %v272_v48 = vld [vmem:[#allocation2 + $0x138] sm:$0xff]  ;;  %v397_v49 = vld [vmem:[#allocation5 + $0x70] sm:$0xff]  ;;  %v422_v50 = vld [vmem:[#allocation5 + $0x138] sm:$0xff]  ;;  %v650_v58 = vadd.f32 %v500_v43, %v350_v41 }
  0x93   : > { %1144 = vmatprep.mubr.bf16.mxu0 %v2526_v0  ;;  %v298_v54 = vld [vmem:[#allocation2 + $0x208] sm:$0xff]  ;;  %v323_v55 = vld [vmem:[#allocation2 + $0x2d0] sm:$0xff]  ;;  %v448_v56 = vld [vmem:[#allocation5 + $0x208] sm:$0xff]  ;;  %v547_v7 = vadd.f32 %v397_v49, %v247_v47  ;;  %v572_v8 = vadd.f32 %v422_v50, %v272_v48 }
  0x94   : > { %v473_v60 = vld [vmem:[#allocation5 + $0x2d0] sm:$0xff]  ;;  %v374_v62 = vld [vmem:[#allocation2 + $0x468] sm:$0xff]  ;;  %v499_v4 = vld [vmem:[#allocation5 + $0x3a0] sm:$0xff]  ;;  %v598_v13 = vadd.f32 %v448_v56, %v298_v54 }
  0x95   : > { %v297_v63 = vld [vmem:[#allocation2 + $0x200] sm:$0xff]  ;;  %v524_v5 = vld [vmem:[#allocation5 + $0x468] sm:$0xff]  ;;  %v254_v6 = vld [vmem:[#allocation2 + $0xa8] sm:$0xff]  ;;  %v623_v14 = vadd.f32 %v473_v60, %v323_v55  ;;  %v697_v26 = vpack.c.bf16 %v572_v8, %v547_v7 }
  0x96   : > { %v404_v11 = vld [vmem:[#allocation5 + $0xa8] sm:$0xff]  ;;  %v429_v12 = vld [vmem:[#allocation5 + $0x170] sm:$0xff]  ;;  %v498_v20 = vld [vmem:[#allocation5 + $0x398] sm:$0xff] }
  0x97   : > { %v523_v21 = vld [vmem:[#allocation5 + $0x460] sm:$0xff]  ;;  %v554_v24 = vadd.f32 %v404_v11, %v254_v6  ;;  %v723_v30 = vpack.c.bf16 %v623_v14, %v598_v13  ;;  %v372_v34 = vld [vmem:[#allocation2 + $0x458] sm:$0xff]  ;;  %v497_v35 = vld [vmem:[#allocation5 + $0x390] sm:$0xff] }
  0x98   : > { %v347_v33 = vld [vmem:[#allocation2 + $0x390] sm:$0xff]  ;;  %v277_v39 = vld [vmem:[#allocation2 + $0x160] sm:$0xff]  ;;  %v278_v54 = vld [vmem:[#allocation2 + $0x168] sm:$0xff] }
  0x99   : > { %2193 = vmatmul.mubr.msk.bf16.gmra.mrb[28].mxu1 %vm772_vm0, %v2722_v27  ;;  %v427_v41 = vld [vmem:[#allocation5 + $0x160] sm:$0xff]  ;;  %v647_v47 = vadd.f32 %v497_v35, %v347_v33  ;;  %v428_v56 = vld [vmem:[#allocation5 + $0x168] sm:$0xff]  ;;  %v453_v6 = vld [vmem:[#allocation5 + $0x230] sm:$0xff] }
  0x9a   : > { %2204 = vmatmul.mubr.msk.bf16.vlgmr.msra.gmra.mrb[28].mxu0 %vm772_vm0, %v2699_v2  ;;  %1063 = vmatprep.mubr.bf16.mxu1 %v2526_v0  ;;  %v577_v50 = vadd.f32 %v427_v41, %v277_v39  ;;  %v403_v55 = vld [vmem:[#allocation5 + $0xa0] sm:$0xff]  ;;  %v478_v7 = vld [vmem:[#allocation5 + $0x2f8] sm:$0xff]  ;;  %v529_v11 = vld [vmem:[#allocation5 + $0x490] sm:$0xff] }
  0x9b   : > { %1275 = vmatpush1.bf16.msra.mxu0 %v695_v22  ;;  %1154 = vmatprep.mubr.bf16.mxu0 %v2526_v0  ;;  %v743_v22 = vpack.c.bf16 %v668_v19, %v643_v18  ;;  %v373_v19 = vld [vmem:[#allocation2 + $0x460] sm:$0xff]  ;;  %v479_v60 = vld [vmem:[#allocation5 + $0x300] sm:$0xff]  ;;  %v354_v8 = vld [vmem:[#allocation2 + $0x3c8] sm:$0xff] }
  0x9c   : > { %1276 = vmatprep.subr.bf16.mxu0 %v721_v29  ;;  %v300_v29 = vld [vmem:[#allocation2 + $0x218] sm:$0xff]  ;;  %v673_v32 = vadd.f32 %v523_v21, %v373_v19  ;;  %v401_v14 = vld [vmem:[#allocation5 + $0x90] sm:$0xff]  ;;  %v302_v19 = vld [vmem:[#allocation2 + $0x228] sm:$0xff] }
  0x9d   : > { %v600_v37 = vadd.f32 %v450_v31, %v300_v29  ;;  %v276_v13 = vld [vmem:[#allocation2 + $0x158] sm:$0xff]  ;;  %v301_v33 = vld [vmem:[#allocation2 + $0x220] sm:$0xff] }
  0x9e   : > { %v476_v39 = vld [vmem:[#allocation5 + $0x2e8] sm:$0xff] }
  0x9f   : > { %1277 = vmatpush1.bf16.msra.mxu0 %v720_v42  ;;  %v375_v42 = vld [vmem:[#allocation2 + $0x470] sm:$0xff]  ;;  %v725_v57 = vpack.c.bf16 %v625_v38, %v600_v37  ;;  %v252_v38 = vld [vmem:[#allocation2 + $0x98] sm:$0xff] }
  0xa0   : > { %1278 = vmatprep.subr.bf16.mxu0 %v746_v53  ;;  %v624_v53 = vadd.f32 %v474_v40, %v324_v36  ;;  %v675_v59 = vadd.f32 %v525_v46, %v375_v42  ;;  %v522_v36 = vld [vmem:[#allocation5 + $0x458] sm:$0xff] }
  0xa1   : > { %2199 = vmatmul.mubr.msk.bf16.vlgmr.msra.gmra.mrb[32].mxu1 %vm772_vm0, %v2699_v2  ;;  %v402_v40 = vld [vmem:[#allocation5 + $0x98] sm:$0xff]  ;;  %v672_v48 = vadd.f32 %v522_v36, %v372_v34 }
  0xa2   : > { %2205 = vmatmul.mubr.msk.bf16.gmra.mrb[32].mxu0 %vm772_vm0, %v2713_v45  ;;  %1194 = vmatpush1.bf16.msra.mxu1 %v693_v61  ;;  %v349_v61 = vld [vmem:[#allocation2 + $0x3a0] sm:$0xff]  ;;  %v724_v9 = vpack.c.bf16 %v624_v53, %v599_v52  ;;  %v750_v18 = vpack.c.bf16 %v675_v59, %v650_v58  ;;  %v552_v49 = vadd.f32 %v402_v40, %v252_v38  ;;  %v454_v59 = vld [vmem:[#allocation5 + $0x238] sm:$0xff]  ;;  %v451_v38 = vld [vmem:[#allocation5 + $0x220] sm:$0xff] }
  0xa3   : > { %1073 = vmatprep.mubr.bf16.mxu1 %v2526_v0  ;;  %1164 = vmatprep.mubr.bf16.mxu0 %v2526_v0  ;;  %v253_v53 = vld [vmem:[#allocation2 + $0xa0] sm:$0xff]  ;;  %v326_v34 = vld [vmem:[#allocation2 + $0x2e8] sm:$0xff]  ;;  %v352_v40 = vld [vmem:[#allocation2 + $0x3b8] sm:$0xff] }
  0xa4   : > { %1195 = vmatprep.subr.bf16.mxu1 %v719_v3  ;;  %1279 = vmatpush1.bf16.msra.mxu0 %v745_v10  ;;  %v322_v3 = vld [vmem:[#allocation2 + $0x2c8] sm:$0xff]  ;;  %v279_v10 = vld [vmem:[#allocation2 + $0x170] sm:$0xff]  ;;  %v702_v52 = vpack.c.bf16 %v577_v50, %v552_v49  ;;  %v329_v58 = vld [vmem:[#allocation2 + $0x300] sm:$0xff]  ;;  %v601_v50 = vadd.f32 %v451_v38, %v301_v33 }
  0xa5   : > { %1436 = vmatprep.subr.bf16.mxu0 %v700_v15  ;;  %v447_v15 = vld [vmem:[#allocation5 + $0x200] sm:$0xff]  ;;  %v579_v25 = vadd.f32 %v429_v12, %v279_v10  ;;  %v504_v10 = vld [vmem:[#allocation5 + $0x3c8] sm:$0xff]  ;;  %v481_v33 = vld [vmem:[#allocation5 + $0x310] sm:$0xff] }
  0xa6   : > { %1196 = vmatpush1.bf16.msra.mxu1 %v718_v16  ;;  %v472_v16 = vld [vmem:[#allocation5 + $0x2c8] sm:$0xff]  ;;  %v597_v28 = vadd.f32 %v447_v15, %v297_v63  ;;  %v303_v63 = vld [vmem:[#allocation2 + $0x230] sm:$0xff] }
  0xa7   : > { %1197 = vmatprep.subr.bf16.mxu1 %v744_v17  ;;  %v348_v17 = vld [vmem:[#allocation2 + $0x398] sm:$0xff]  ;;  %v622_v29 = vadd.f32 %v472_v16, %v322_v3  ;;  %v704_v42 = vpack.c.bf16 %v579_v25, %v554_v24  ;;  %v251_v12 = vld [vmem:[#allocation2 + $0x90] sm:$0xff]  ;;  %v603_v16 = vadd.f32 %v453_v6, %v303_v63  ;;  %v477_v25 = vld [vmem:[#allocation5 + $0x2f0] sm:$0xff] }
  0xa8   : > { %v648_v31 = vadd.f32 %v498_v20, %v348_v17  ;;  %v328_v3 = vld [vmem:[#allocation2 + $0x2f8] sm:$0xff]  ;;  %v327_v20 = vld [vmem:[#allocation2 + $0x2f0] sm:$0xff] }
  0xa9   : > { %2200 = vmatmul.mubr.msk.bf16.gmra.mrb[36].mxu1 %vm772_vm0, %v2713_v45  ;;  %v722_v43 = vpack.c.bf16 %v622_v29, %v597_v28  ;;  %v628_v17 = vadd.f32 %v478_v7, %v328_v3  ;;  %v452_v24 = vld [vmem:[#allocation5 + $0x228] sm:$0xff]  ;;  %v378_v28 = vld [vmem:[#allocation2 + $0x488] sm:$0xff]  ;;  %v503_v29 = vld [vmem:[#allocation5 + $0x3c0] sm:$0xff] }
  0xaa   : > { %2206 = vmatmul.mubr.msk.bf16.gmra.mrb[36].mxu0 %vm772_vm0, %v2697_v1  ;;  %1083 = vmatprep.mubr.bf16.mxu1 %v2526_v0  ;;  %v748_v46 = vpack.c.bf16 %v673_v32, %v648_v31  ;;  %v551_v31 = vadd.f32 %v401_v14, %v251_v12  ;;  %v602_v36 = vadd.f32 %v452_v24, %v302_v19  ;;  %v431_v63 = vld [vmem:[#allocation5 + $0x180] sm:$0xff]  ;;  %v257_v12 = vld [vmem:[#allocation2 + $0xc0] sm:$0xff]  ;;  %v332_v19 = vld [vmem:[#allocation2 + $0x318] sm:$0xff] }
  0xab   : > { %1174 = vmatprep.mubr.bf16.mxu0 %v2526_v0  ;;  %1198 = vmatpush1.bf16.msra.mxu1 %v743_v22  ;;  %v649_v22 = vadd.f32 %v499_v4, %v349_v61  ;;  %v553_v61 = vadd.f32 %v403_v55, %v253_v53  ;;  %v728_v35 = vpack.c.bf16 %v628_v17, %v603_v16  ;;  %v351_v55 = vld [vmem:[#allocation2 + $0x3b0] sm:$0xff]  ;;  %v405_v24 = vld [vmem:[#allocation5 + $0xb0] sm:$0xff] }
  0xac   : > { %1355 = vmatprep.subr.bf16.mxu1 %v698_v23  ;;  %v674_v23 = vadd.f32 %v524_v5, %v374_v62  ;;  %v578_v62 = vadd.f32 %v428_v56, %v278_v54  ;;  %v629_v5 = vadd.f32 %v479_v60, %v329_v58  ;;  %v376_v56 = vld [vmem:[#allocation2 + $0x478] sm:$0xff]  ;;  %v526_v58 = vld [vmem:[#allocation5 + $0x478] sm:$0xff]  ;;  %v407_v14 = vld [vmem:[#allocation5 + $0xc0] sm:$0xff] }
  0xad   : > { %v256_v60 = vld [vmem:[#allocation2 + $0xb8] sm:$0xff]  ;;  %v676_v6 = vadd.f32 %v526_v58, %v376_v56  ;;  %v557_v16 = vadd.f32 %v407_v14, %v257_v12 }
  0xae   : > { %v749_v37 = vpack.c.bf16 %v674_v23, %v649_v22  ;;  %v703_v15 = vpack.c.bf16 %v578_v62, %v553_v61  ;;  %v654_v22 = vadd.f32 %v504_v10, %v354_v8  ;;  %v281_v61 = vld [vmem:[#allocation2 + $0x180] sm:$0xff]  ;;  %v406_v62 = vld [vmem:[#allocation5 + $0xb8] sm:$0xff] }
  0xaf   : > { %v556_v7 = vadd.f32 %v406_v62, %v256_v60  ;;  %v581_v8 = vadd.f32 %v431_v63, %v281_v61  ;;  %v355_v61 = vld [vmem:[#allocation2 + $0x3d0] sm:$0xff]  ;;  %v380_v62 = vld [vmem:[#allocation2 + $0x498] sm:$0xff]  ;;  %v505_v63 = vld [vmem:[#allocation5 + $0x3d0] sm:$0xff] }
  0xb1   : > { %2201 = vmatmul.mubr.msk.bf16.gmra.mrb[40].mxu1 %vm772_vm0, %v2697_v1 }
  0xb2   : > { %2207 = vmatmul.mubr.msk.bf16.gmra.mrb[40].mxu0 %vm772_vm0, %v2711_v44  ;;  %1093 = vmatprep.mubr.bf16.mxu1 %v2526_v0 }
  0xb3   : > { %1184 = vmatprep.mubr.bf16.mxu0 %v2526_v0 }
  0xb9   : > { %2202 = vmatmul.mubr.msk.bf16.gmra.mrb[44].mxu1 %vm772_vm0, %v2711_v44 }
  0xba   : > { %2208 = vmatmul.mubr.msk.bf16.gmra.mrb[44].mxu0 %vm772_vm0, %v2722_v27  ;;  %1103 = vmatprep.mubr.bf16.mxu1 %v2526_v0 }
  0xbb   : > { %1306 = vmatprep.mubr.bf16.mxu0 %v2526_v0 }
  0xc1   : > { %2203 = vmatmul.mubr.msk.bf16.gmra.mrb[48].mxu1 %vm772_vm0, %v2722_v27 }
  0xc2   : > { %2214 = vmatmul.mubr.msk.bf16.vlgmr.msra.gmra.mrb[48].mxu0 %vm772_vm0, %v2699_v2  ;;  %1225 = vmatprep.mubr.bf16.mxu1 %v2526_v0 }
  0xc3   : > { %1437 = vmatpush1.bf16.msra.mxu0 %v699_v51  ;;  %1316 = vmatprep.mubr.bf16.mxu0 %v2526_v0  ;;  %v747_v51 = vpack.c.bf16 %v672_v48, %v647_v47 }
  0xc4   : > { %1438 = vmatprep.subr.bf16.mxu0 %v725_v57  ;;  %v304_v57 = vld [vmem:[#allocation2 + $0x238] sm:$0xff] }
  0xc5   : > { %v604_v4 = vadd.f32 %v454_v59, %v304_v57  ;;  %v501_v57 = vld [vmem:[#allocation5 + $0x3b0] sm:$0xff] }
  0xc7   : > { %1439 = vmatpush1.bf16.msra.mxu0 %v724_v9  ;;  %v379_v9 = vld [vmem:[#allocation2 + $0x490] sm:$0xff]  ;;  %v729_v21 = vpack.c.bf16 %v629_v5, %v604_v4  ;;  %v651_v5 = vadd.f32 %v501_v57, %v351_v55 }
  0xc8   : > { %1440 = vmatprep.subr.bf16.mxu0 %v750_v18  ;;  %v426_v18 = vld [vmem:[#allocation5 + $0x158] sm:$0xff]  ;;  %v679_v23 = vadd.f32 %v529_v11, %v379_v9  ;;  %v2527_v9 = vmov 0.0   ;;  %v706_v11 = vpack.c.bf16 %v581_v8, %v556_v7  ;;  %v655_v7 = vadd.f32 %v505_v63, %v355_v61 }
  0xc9   : > { %2209 = vmatmul.mubr.msk.bf16.vlgmr.msra.gmra.mrb[52].mxu1 %vm772_vm0, %v2699_v2  ;;  %v576_v32 = vadd.f32 %v426_v18, %v276_v13  ;;  %v751_v10 = vpack.c.bf16 %v676_v6, %v651_v5  ;;  %v282_v13 = vld [vmem:[#allocation2 + $0x188] sm:$0xff]  ;;  %v307_v18 = vld [vmem:[#allocation2 + $0x250] sm:$0xff] }
  0xca   : > { %2215 = vmatmul.mubr.msk.bf16.gmra.mrb[52].mxu0 %vm772_vm0, %v2713_v45  ;;  %1356 = vmatpush1.bf16.msra.mxu1 %v697_v26  ;;  %v353_v26 = vld [vmem:[#allocation2 + $0x3c0] sm:$0xff]  ;;  %v754_v41 = vpack.c.bf16 %v679_v23, %v654_v22  ;;  %v255_v22 = vld [vmem:[#allocation2 + $0xb0] sm:$0xff]  ;;  %v280_v23 = vld [vmem:[#allocation2 + $0x178] sm:$0xff] }
  0xcb   : > { %1235 = vmatprep.mubr.bf16.mxu1 %v2526_v0  ;;  %1326 = vmatprep.mubr.bf16.mxu0 %v2526_v0  ;;  %v653_v47 = vadd.f32 %v503_v29, %v353_v26  ;;  %v701_v49 = vpack.c.bf16 %v576_v32, %v551_v31  ;;  %v430_v29 = vld [vmem:[#allocation5 + $0x178] sm:$0xff]  ;;  %v331_v31 = vld [vmem:[#allocation2 + $0x310] sm:$0xff]  ;;  %v456_v32 = vld [vmem:[#allocation5 + $0x248] sm:$0xff]  ;;  %v555_v38 = vadd.f32 %v405_v24, %v255_v22 }
  0xcc   : > { %1357 = vmatprep.subr.bf16.mxu1 %v723_v30  ;;  %1441 = vmatpush1.bf16.msra.mxu0 %v749_v37  ;;  %v528_v30 = vld [vmem:[#allocation5 + $0x488] sm:$0xff]  ;;  %v627_v37 = vadd.f32 %v477_v25, %v327_v20  ;;  %v457_v20 = vld [vmem:[#allocation5 + $0x250] sm:$0xff] }
  0xcd   : > { %1598 = vmatprep.subr.bf16.mxu0 %v704_v42  ;;  %v377_v42 = vld [vmem:[#allocation2 + $0x480] sm:$0xff]  ;;  %v678_v48 = vadd.f32 %v528_v30, %v378_v28  ;;  %v607_v26 = vadd.f32 %v457_v20, %v307_v18  ;;  %v306_v30 = vld [vmem:[#allocation2 + $0x248] sm:$0xff] }
  0xce   : > { %1358 = vmatpush1.bf16.msra.mxu1 %v722_v43  ;;  %v502_v43 = vld [vmem:[#allocation5 + $0x3b8] sm:$0xff] }
  0xcf   : > { %1359 = vmatprep.subr.bf16.mxu1 %v748_v46  ;;  %v527_v46 = vld [vmem:[#allocation5 + $0x480] sm:$0xff]  ;;  %v652_v53 = vadd.f32 %v502_v43, %v352_v40  ;;  %v753_v59 = vpack.c.bf16 %v678_v48, %v653_v47  ;;  %v305_v40 = vld [vmem:[#allocation2 + $0x240] sm:$0xff]  ;;  %v606_v43 = vadd.f32 %v456_v32, %v306_v30  ;;  %v480_v48 = vld [vmem:[#allocation5 + $0x308] sm:$0xff] }
  0xd0   : > { %v677_v54 = vadd.f32 %v527_v46, %v377_v42  ;;  %v631_v46 = vadd.f32 %v481_v33, %v331_v31  ;;  %v455_v47 = vld [vmem:[#allocation5 + $0x240] sm:$0xff] }
  0xd1   : > { %2210 = vmatmul.mubr.msk.bf16.gmra.mrb[56].mxu1 %vm772_vm0, %v2713_v45  ;;  %v605_v56 = vadd.f32 %v455_v47, %v305_v40 }
  0xd2   : > { %2216 = vmatmul.mubr.msk.bf16.gmra.mrb[56].mxu0 %vm772_vm0, %v2697_v1  ;;  %1245 = vmatprep.mubr.bf16.mxu1 %v2526_v0  ;;  %v752_v4 = vpack.c.bf16 %v677_v54, %v652_v53  ;;  %v731_v58 = vpack.c.bf16 %v631_v46, %v606_v43 }
  0xd3   : > { %1336 = vmatprep.mubr.bf16.mxu0 %v2526_v0  ;;  %1360 = vmatpush1.bf16.msra.mxu1 %v747_v51  ;;  %v626_v51 = vadd.f32 %v476_v39, %v326_v34  ;;  %v357_v34 = vld [vmem:[#allocation2 + $0x3e0] sm:$0xff]  ;;  %v580_v39 = vadd.f32 %v430_v29, %v280_v23 }
  0xd4   : > { %1517 = vmatprep.subr.bf16.mxu1 %v702_v52  ;;  %v727_v52 = vpack.c.bf16 %v627_v37, %v602_v36  ;;  %v507_v36 = vld [vmem:[#allocation5 + $0x3e0] sm:$0xff]  ;;  %v532_v37 = vld [vmem:[#allocation5 + $0x4a8] sm:$0xff] }
  0xd5   : > { %v726_v3 = vpack.c.bf16 %v626_v51, %v601_v50  ;;  %v381_v50 = vld [vmem:[#allocation2 + $0x4a0] sm:$0xff]  ;;  %v506_v51 = vld [vmem:[#allocation5 + $0x3d8] sm:$0xff]  ;;  %v657_v53 = vadd.f32 %v507_v36, %v357_v34  ;;  %v705_v55 = vpack.c.bf16 %v580_v39, %v555_v38 }
  0xd9   : > { %2211 = vmatmul.mubr.msk.bf16.gmra.mrb[60].mxu1 %vm772_vm0, %v2697_v1 }
  0xda   : > { %2217 = vmatmul.mubr.msk.bf16.gmra.mrb[60].mxu0 %vm772_vm0, %v2711_v44  ;;  %1255 = vmatprep.mubr.bf16.mxu1 %v2526_v0 }
  0xdb   : > { %1346 = vmatprep.mubr.bf16.mxu0 %v2526_v0 }
  0xe1   : > { %2212 = vmatmul.mubr.msk.bf16.gmra.mrb[64].mxu1 %vm772_vm0, %v2711_v44 }
  0xe2   : > { %2218 = vmatmul.mubr.msk.bf16.gmra.mrb[64].mxu0 %vm772_vm0, %v2722_v27  ;;  %1265 = vmatprep.mubr.bf16.mxu1 %v2526_v0 }
  0xe3   : > { %1468 = vmatprep.mubr.bf16.mxu0 %v2526_v0 }
  0xe9   : > { %2213 = vmatmul.mubr.msk.bf16.gmra.mrb[68].mxu1 %vm772_vm0, %v2722_v27 }
  0xea   : > { %2224 = vmatmul.mubr.msk.bf16.vlgmr.msra.gmra.mrb[68].mxu0 %vm772_vm0, %v2699_v2  ;;  %1387 = vmatprep.mubr.bf16.mxu1 %v2526_v0 }
  0xeb   : > { %1599 = vmatpush1.bf16.msra.mxu0 %v703_v15  ;;  %1478 = vmatprep.mubr.bf16.mxu0 %v2526_v0  ;;  %v432_v15 = vld [vmem:[#allocation5 + $0x188] sm:$0xff] }
  0xec   : > { %1600 = vmatprep.subr.bf16.mxu0 %v729_v21  ;;  %v582_v17 = vadd.f32 %v432_v15, %v282_v13  ;;  %v482_v21 = vld [vmem:[#allocation5 + $0x318] sm:$0xff] }
  0xed   : > { %v632_v28 = vadd.f32 %v482_v21, %v332_v19 }
  0xee   : > { %v707_v25 = vpack.c.bf16 %v582_v17, %v557_v16 }
  0xef   : > { %1601 = vmatpush1.bf16.msra.mxu0 %v728_v35  ;;  %v382_v35 = vld [vmem:[#allocation2 + $0x4a8] sm:$0xff]  ;;  %v732_v42 = vpack.c.bf16 %v632_v28, %v607_v26 }
  0xf0   : > { %1602 = vmatprep.subr.bf16.mxu0 %v754_v41  ;;  %v330_v41 = vld [vmem:[#allocation2 + $0x308] sm:$0xff]  ;;  %v682_v54 = vadd.f32 %v532_v37, %v382_v35 }
  0xf1   : > { %2219 = vmatmul.mubr.msk.bf16.vlgmr.msra.gmra.mrb[72].mxu1 %vm772_vm0, %v2699_v2  ;;  %v630_v57 = vadd.f32 %v480_v48, %v330_v41 }
  0xf2   : > { %2225 = vmatmul.mubr.msk.bf16.gmra.mrb[72].mxu0 %vm772_vm0, %v2713_v45  ;;  %1518 = vmatpush1.bf16.msra.mxu1 %v701_v49  ;;  %v356_v49 = vld [vmem:[#allocation2 + $0x3d8] sm:$0xff] }
  0xf3   : > { %1397 = vmatprep.mubr.bf16.mxu1 %v2526_v0  ;;  %1488 = vmatprep.mubr.bf16.mxu0 %v2526_v0  ;;  %v730_v5 = vpack.c.bf16 %v630_v57, %v605_v56 }
  0xf4   : > { %1519 = vmatprep.subr.bf16.mxu1 %v727_v52  ;;  %1603 = vmatpush1.bf16.msra.mxu0 %v753_v59  ;;  %v531_v52 = vld [vmem:[#allocation5 + $0x4a0] sm:$0xff]  ;;  %v656_v59 = vadd.f32 %v506_v51, %v356_v49 }
  0xf5   : > { %2260 = vmatprep.subr.bf16.mxu0 %v2527_v9  ;;  %v681_v60 = vadd.f32 %v531_v52, %v381_v50 }
  0xf6   : > { %1520 = vmatpush1.bf16.msra.mxu1 %v726_v3  ;;  %v530_v3 = vld [vmem:[#allocation5 + $0x498] sm:$0xff] }
  0xf7   : > { %1521 = vmatprep.subr.bf16.mxu1 %v752_v4  ;;  %v757_v4 = vpack.c.bf16 %v682_v54, %v657_v53  ;;  %v756_v6 = vpack.c.bf16 %v681_v60, %v656_v59  ;;  %v680_v8 = vadd.f32 %v530_v3, %v380_v62 }
  0xf9   : > { %2220 = vmatmul.mubr.msk.bf16.gmra.mrb[76].mxu1 %vm772_vm0, %v2713_v45 }
  0xfa   : > { %2226 = vmatmul.mubr.msk.bf16.gmra.mrb[76].mxu0 %vm772_vm0, %v2697_v1  ;;  %1407 = vmatprep.mubr.bf16.mxu1 %v2526_v0 }
  0xfb   : > { %1498 = vmatprep.mubr.bf16.mxu0 %v2526_v0  ;;  %1522 = vmatpush1.bf16.msra.mxu1 %v751_v10  ;;  %v755_v10 = vpack.c.bf16 %v680_v8, %v655_v7 }
  0xfc   : > { %1679 = vmatprep.subr.bf16.mxu1 %v706_v11 }
 0x101   : > { %2221 = vmatmul.mubr.msk.bf16.gmra.mrb[80].mxu1 %vm772_vm0, %v2697_v1 }
 0x102   : > { %2227 = vmatmul.mubr.msk.bf16.gmra.mrb[80].mxu0 %vm772_vm0, %v2711_v44  ;;  %1417 = vmatprep.mubr.bf16.mxu1 %v2526_v0 }
 0x103   : > { %1508 = vmatprep.mubr.bf16.mxu0 %v2526_v0 }
 0x109   : > { %2222 = vmatmul.mubr.msk.bf16.gmra.mrb[84].mxu1 %vm772_vm0, %v2711_v44 }
 0x10a   : > { %2228 = vmatmul.mubr.msk.bf16.gmra.mrb[84].mxu0 %vm772_vm0, %v2722_v27  ;;  %1427 = vmatprep.mubr.bf16.mxu1 %v2526_v0 }
 0x10b   : > { %1630 = vmatprep.mubr.bf16.mxu0 %v2526_v0 }
 0x111   : > { %2223 = vmatmul.mubr.msk.bf16.gmra.mrb[88].mxu1 %vm772_vm0, %v2722_v27 }
 0x112   : > { %2234 = vmatmul.mubr.msk.bf16.vlgmr.msra.gmra.mrb[88].mxu0 %vm772_vm0, %v2699_v2  ;;  %1549 = vmatprep.mubr.bf16.mxu1 %v2526_v0 }
 0x113   : > { %2261 = vmatpush3.bf16.msra.mxu0 %v707_v25  ;;  %1640 = vmatprep.mubr.bf16.mxu0 %v2526_v0 }
 0x114   : > { %2262 = vmatprep.subr.bf16.mxu0 %v2527_v9 }
 0x117   : > { %2263 = vmatpush3.bf16.msra.mxu0 %v732_v42 }
 0x118   : > { %2264 = vmatprep.subr.bf16.mxu0 %v2527_v9 }
 0x119   : > { %2229 = vmatmul.mubr.msk.bf16.vlgmr.msra.gmra.mrb[92].mxu1 %vm772_vm0, %v2699_v2 }
 0x11a   : > { %2235 = vmatmul.mubr.msk.bf16.gmra.mrb[92].mxu0 %vm772_vm0, %v2713_v45  ;;  %1680 = vmatpush1.bf16.msra.mxu1 %v705_v55 }
 0x11b   : > { %1559 = vmatprep.mubr.bf16.mxu1 %v2526_v0  ;;  %1650 = vmatprep.mubr.bf16.mxu0 %v2526_v0 }
 0x11c   : > { %1681 = vmatprep.subr.bf16.mxu1 %v731_v58  ;;  %2265 = vmatpush3.bf16.msra.mxu0 %v757_v4 }
 0x11e   : > { %1682 = vmatpush1.bf16.msra.mxu1 %v730_v5 }
 0x11f   : > { %1683 = vmatprep.subr.bf16.mxu1 %v756_v6 }
 0x121   : > { %2230 = vmatmul.mubr.msk.bf16.gmra.mrb[96].mxu1 %vm772_vm0, %v2713_v45 }
 0x122   : > { %2236 = vmatmul.mubr.msk.bf16.gmra.mrb[96].mxu0 %vm772_vm0, %v2697_v1  ;;  %1569 = vmatprep.mubr.bf16.mxu1 %v2526_v0 }
 0x123   : > { %1660 = vmatprep.mubr.bf16.mxu0 %v2526_v0  ;;  %1684 = vmatpush1.bf16.msra.mxu1 %v755_v10 }
 0x129   : > { %2231 = vmatmul.mubr.msk.bf16.gmra.mrb[100].mxu1 %vm772_vm0, %v2697_v1 }
 0x12a   : > { %2237 = vmatmul.mubr.msk.bf16.gmra.mrb[100].mxu0 %vm772_vm0, %v2711_v44  ;;  %1579 = vmatprep.mubr.bf16.mxu1 %v2526_v0 }
 0x12b   : > { %1670 = vmatprep.mubr.bf16.mxu0 %v2526_v0 }
 0x131   : > { %2232 = vmatmul.mubr.msk.bf16.gmra.mrb[104].mxu1 %vm772_vm0, %v2711_v44 }
 0x132   : > { %2238 = vmatmul.mubr.msk.bf16.gmra.mrb[104].mxu0 %vm772_vm0, %v2722_v27  ;;  %1589 = vmatprep.mubr.bf16.mxu1 %v2526_v0 }
 0x133   : > { %2266 = vmatprep.mubr.msk.bf16.mxu0 %vm2528_vm1, %v2527_v9 }
 0x134   : > { %v842_v11 = vpop.f32.mrb[0].mxu1  ;;  %v822_v12 = vpop.f32.mrb[0].mxu0 }
 0x135   : > { %1933 = vst [vmem:[%s2881_s6 + $0x320] sm:$0xff] %v842_v11  ;;  %v844_v13 = vpop.f32.mrb[1].mxu1  ;;  %1832 = vst [vmem:[%s2881_s6] sm:$0xff] %v822_v12  ;;  %v824_v14 = vpop.f32.mrb[1].mxu0 }
 0x136   : > { %1934 = vst [vmem:[%s2881_s6 + $0x328] sm:$0xff] %v844_v13  ;;  %v846_v15 = vpop.f32.mrb[2].mxu1  ;;  %1833 = vst [vmem:[%s2881_s6 + $0x8] sm:$0xff] %v824_v14  ;;  %v826_v16 = vpop.f32.mrb[2].mxu0 }
 0x137   : > { %1958 = vst [vmem:[%s2881_s6 + $0x3e8] sm:$0xff] %v846_v15  ;;  %v848_v17 = vpop.f32.mrb[3].mxu1  ;;  %1858 = vst [vmem:[%s2881_s6 + $0xc8] sm:$0xff] %v826_v16  ;;  %v828_v18 = vpop.f32.mrb[3].mxu0 }
 0x138   : > { %1959 = vst [vmem:[%s2881_s6 + $0x3f0] sm:$0xff] %v848_v17  ;;  %1859 = vst [vmem:[%s2881_s6 + $0xd0] sm:$0xff] %v828_v18 }
 0x139   : > { %2233 = vmatmul.mubr.msk.bf16.gmra.mrb[108].mxu1 %vm772_vm0, %v2722_v27 }
 0x13a   : > { %2267 = vmatmul.mubr.msk.bf16.vlgmr.msra.gmra.mrb[108].mxu0 %vm772_vm0, %v2699_v2  ;;  %1711 = vmatprep.mubr.bf16.mxu1 %v2526_v0 }
 0x13b   : > { %2270 = vmatprep.mubr.msk.bf16.mxu0 %vm2528_vm1, %v2527_v9 }
 0x13c   : > { %v852_v19 = vpop.f32.mrb[4].mxu1  ;;  %v832_v20 = vpop.f32.mrb[4].mxu0 }
 0x13d   : > { %1983 = vst [vmem:[%s2881_s6 + $0x4b0] sm:$0xff] %v852_v19  ;;  %v854_v21 = vpop.f32.mrb[5].mxu1  ;;  %1883 = vst [vmem:[%s2881_s6 + $0x190] sm:$0xff] %v832_v20  ;;  %v834_v22 = vpop.f32.mrb[5].mxu0 }
 0x13e   : > { %1984 = vst [vmem:[%s2881_s6 + $0x4b8] sm:$0xff] %v854_v21  ;;  %v856_v23 = vpop.f32.mrb[6].mxu1  ;;  %1884 = vst [vmem:[%s2881_s6 + $0x198] sm:$0xff] %v834_v22  ;;  %v836_v24 = vpop.f32.mrb[6].mxu0 }
 0x13f   : > { %2008 = vst [vmem:[%s2881_s6 + $0x578] sm:$0xff] %v856_v23  ;;  %v858_v25 = vpop.f32.mrb[7].mxu1  ;;  %1908 = vst [vmem:[%s2881_s6 + $0x258] sm:$0xff] %v836_v24  ;;  %v838_v26 = vpop.f32.mrb[7].mxu0 }
 0x140   : > { %2009 = vst [vmem:[%s2881_s6 + $0x580] sm:$0xff] %v858_v25  ;;  %1909 = vst [vmem:[%s2881_s6 + $0x260] sm:$0xff] %v838_v26 }
 0x141   : > { %2239 = vmatmul.mubr.msk.bf16.vlgmr.msra.gmra.mrb[112].mxu1 %vm772_vm0, %v2699_v2 }
 0x142   : > { %2271 = vmatmul.mubr.msk.bf16.gmra.mrb[112].mxu0 %vm772_vm0, %v2713_v45  ;;  %1721 = vmatprep.mubr.bf16.mxu1 %v2526_v0 }
 0x143   : > { %2274 = vmatprep.mubr.msk.bf16.mxu0 %vm2528_vm1, %v2527_v9 }
 0x144   : > { %v862_v28 = vpop.f32.mrb[8].mxu1 }
 0x145   : > { %v984_v29 = vpop.f32.mrb[8].mxu0  ;;  %2033 = vst [vmem:[%s2881_s6 + $0x640] sm:$0xff] %v862_v28  ;;  %v864_v30 = vpop.f32.mrb[9].mxu1 }
 0x146   : > { %1836 = vst [vmem:[%s2881_s6 + $0x20] sm:$0xff] %v984_v29  ;;  %v986_v31 = vpop.f32.mrb[9].mxu0  ;;  %2034 = vst [vmem:[%s2881_s6 + $0x648] sm:$0xff] %v864_v30  ;;  %v866_v32 = vpop.f32.mrb[10].mxu1 }
 0x147   : > { %1837 = vst [vmem:[%s2881_s6 + $0x28] sm:$0xff] %v986_v31  ;;  %v988_v2 = vpop.f32.mrb[10].mxu0  ;;  %v867_v33 = vpop.f32.mrb[11].mxu1 }
 0x148   : > { %1862 = vst [vmem:[%s2881_s6 + $0xe8] sm:$0xff] %v988_v2  ;;  %v990_v34 = vpop.f32.mrb[11].mxu0 }
 0x149   : > { %1863 = vst [vmem:[%s2881_s6 + $0xf0] sm:$0xff] %v990_v34  ;;  %2240 = vmatmul.mubr.msk.bf16.gmra.mrb[116].mxu1 %vm772_vm0, %v2713_v45 }
 0x14a   : > { %2275 = vmatmul.mubr.msk.bf16.gmra.mrb[116].mxu0 %vm772_vm0, %v2697_v1  ;;  %1731 = vmatprep.mubr.bf16.mxu1 %v2526_v0 }
 0x14b   : > { %2278 = vmatprep.mubr.msk.bf16.mxu0 %vm2528_vm1, %v2527_v9 }
 0x14c   : > { %v903_v35 = vpop.f32.mrb[12].mxu1 }
 0x14d   : > { %v994_v36 = vpop.f32.mrb[12].mxu0  ;;  %1834 = vst [vmem:[%s2881_s6 + $0x10] sm:$0xff] %v903_v35  ;;  %v905_v37 = vpop.f32.mrb[13].mxu1 }
 0x14e   : > { %1887 = vst [vmem:[%s2881_s6 + $0x1b0] sm:$0xff] %v994_v36  ;;  %v996_v38 = vpop.f32.mrb[13].mxu0  ;;  %1835 = vst [vmem:[%s2881_s6 + $0x18] sm:$0xff] %v905_v37  ;;  %v907_v45 = vpop.f32.mrb[14].mxu1 }
 0x14f   : > { %1888 = vst [vmem:[%s2881_s6 + $0x1b8] sm:$0xff] %v996_v38  ;;  %v998_v39 = vpop.f32.mrb[14].mxu0  ;;  %1860 = vst [vmem:[%s2881_s6 + $0xd8] sm:$0xff] %v907_v45  ;;  %v909_v40 = vpop.f32.mrb[15].mxu1 }
 0x150   : > { %1912 = vst [vmem:[%s2881_s6 + $0x278] sm:$0xff] %v998_v39  ;;  %v1000_v41 = vpop.f32.mrb[15].mxu0  ;;  %1861 = vst [vmem:[%s2881_s6 + $0xe0] sm:$0xff] %v909_v40 }
 0x151   : > { %1913 = vst [vmem:[%s2881_s6 + $0x280] sm:$0xff] %v1000_v41  ;;  %2241 = vmatmul.mubr.msk.bf16.gmra.mrb[120].mxu1 %vm772_vm0, %v2697_v1 }
 0x152   : > { %2279 = vmatmul.mubr.msk.bf16.gmra.mrb[120].mxu0 %vm772_vm0, %v2711_v44  ;;  %1741 = vmatprep.mubr.bf16.mxu1 %v2526_v0 }
 0x153   : > { %2282 = vmatprep.mubr.msk.bf16.mxu0 %vm2528_vm1, %v2527_v9 }
 0x154   : > { %v913_v42 = vpop.f32.mrb[16].mxu1 }
 0x155   : > { %v1004_v43 = vpop.f32.mrb[16].mxu0  ;;  %1885 = vst [vmem:[%s2881_s6 + $0x1a0] sm:$0xff] %v913_v42  ;;  %v915_v46 = vpop.f32.mrb[17].mxu1 }
 0x156   : > { %1937 = vst [vmem:[%s2881_s6 + $0x340] sm:$0xff] %v1004_v43  ;;  %v1006_v47 = vpop.f32.mrb[17].mxu0  ;;  %1886 = vst [vmem:[%s2881_s6 + $0x1a8] sm:$0xff] %v915_v46  ;;  %v917_v1 = vpop.f32.mrb[18].mxu1 }
 0x157   : > { %1938 = vst [vmem:[%s2881_s6 + $0x348] sm:$0xff] %v1006_v47  ;;  %v1008_v48 = vpop.f32.mrb[18].mxu0  ;;  %1910 = vst [vmem:[%s2881_s6 + $0x268] sm:$0xff] %v917_v1  ;;  %v919_v49 = vpop.f32.mrb[19].mxu1 }
 0x158   : > { %1962 = vst [vmem:[%s2881_s6 + $0x408] sm:$0xff] %v1008_v48  ;;  %v1010_v50 = vpop.f32.mrb[19].mxu0  ;;  %1911 = vst [vmem:[%s2881_s6 + $0x270] sm:$0xff] %v919_v49 }
 0x159   : > { %1963 = vst [vmem:[%s2881_s6 + $0x410] sm:$0xff] %v1010_v50  ;;  %2242 = vmatmul.mubr.msk.bf16.gmra.mrb[124].mxu1 %vm772_vm0, %v2711_v44 }
 0x15a   : > { %2283 = vmatmul.mubr.msk.bf16.gmra.mrb[124].mxu0 %vm772_vm0, %v2722_v27  ;;  %1751 = vmatprep.mubr.bf16.mxu1 %v2526_v0 }
 0x15c   : > { %v923_v9 = vpop.f32.mrb[20].mxu1 }
 0x15d   : > { %v1014_v51 = vpop.f32.mrb[20].mxu0  ;;  %1935 = vst [vmem:[%s2881_s6 + $0x330] sm:$0xff] %v923_v9  ;;  %v925_v52 = vpop.f32.mrb[21].mxu1 }
 0x15e   : > { %1987 = vst [vmem:[%s2881_s6 + $0x4d0] sm:$0xff] %v1014_v51  ;;  %v1016_v53 = vpop.f32.mrb[21].mxu0  ;;  %1936 = vst [vmem:[%s2881_s6 + $0x338] sm:$0xff] %v925_v52  ;;  %v927_v54 = vpop.f32.mrb[22].mxu1 }
 0x15f   : > { %1988 = vst [vmem:[%s2881_s6 + $0x4d8] sm:$0xff] %v1016_v53  ;;  %v1018_v44 = vpop.f32.mrb[22].mxu0  ;;  %1960 = vst [vmem:[%s2881_s6 + $0x3f8] sm:$0xff] %v927_v54  ;;  %v929_v55 = vpop.f32.mrb[23].mxu1 }
 0x160   : > { %2012 = vst [vmem:[%s2881_s6 + $0x598] sm:$0xff] %v1018_v44  ;;  %v1020_v0 = vpop.f32.mrb[23].mxu0  ;;  %1961 = vst [vmem:[%s2881_s6 + $0x400] sm:$0xff] %v929_v55 }
 0x161   : > { %2013 = vst [vmem:[%s2881_s6 + $0x5a0] sm:$0xff] %v1020_v0  ;;  %2243 = vmatmul.mubr.msk.bf16.gmra.mrb[128].mxu1 %vm772_vm0, %v2722_v27 }
 0x164   : > { %v933_v56 = vpop.f32.mrb[24].mxu1 }
 0x165   : > { %v1024_v57 = vpop.f32.mrb[24].mxu0  ;;  %1985 = vst [vmem:[%s2881_s6 + $0x4c0] sm:$0xff] %v933_v56  ;;  %v935_v58 = vpop.f32.mrb[25].mxu1 }
 0x166   : > { %2037 = vst [vmem:[%s2881_s6 + $0x660] sm:$0xff] %v1024_v57  ;;  %v1026_v59 = vpop.f32.mrb[25].mxu0  ;;  %1986 = vst [vmem:[%s2881_s6 + $0x4c8] sm:$0xff] %v935_v58  ;;  %v937_v60 = vpop.f32.mrb[26].mxu1 }
 0x167   : > { %2038 = vst [vmem:[%s2881_s6 + $0x668] sm:$0xff] %v1026_v59  ;;  %v1028_v61 = vpop.f32.mrb[26].mxu0  ;;  %2010 = vst [vmem:[%s2881_s6 + $0x588] sm:$0xff] %v937_v60  ;;  %v939_v62 = vpop.f32.mrb[27].mxu1 }
 0x168   : > { %v1029_v63 = vpop.f32.mrb[27].mxu0  ;;  %2011 = vst [vmem:[%s2881_s6 + $0x590] sm:$0xff] %v939_v62 }
 0x16c   : > { %v943_v27 = vpop.f32.mrb[28].mxu1 }
 0x16d   : > { %v1146_v3 = vpop.f32.mrb[28].mxu0  ;;  %2035 = vst [vmem:[%s2881_s6 + $0x650] sm:$0xff] %v943_v27  ;;  %v945_v4 = vpop.f32.mrb[29].mxu1 }
 0x16e   : > { %1840 = vst [vmem:[%s2881_s6 + $0x40] sm:$0xff] %v1146_v3  ;;  %v1148_v5 = vpop.f32.mrb[29].mxu0  ;;  %2036 = vst [vmem:[%s2881_s6 + $0x658] sm:$0xff] %v945_v4  ;;  %v947_v6 = vpop.f32.mrb[30].mxu1 }
 0x16f   : > { %1841 = vst [vmem:[%s2881_s6 + $0x48] sm:$0xff] %v1148_v5  ;;  %v1150_v7 = vpop.f32.mrb[30].mxu0  ;;  %v948_v8 = vpop.f32.mrb[31].mxu1 }
 0x170   : > { %1866 = vst [vmem:[%s2881_s6 + $0x108] sm:$0xff] %v1150_v7  ;;  %v1152_v10 = vpop.f32.mrb[31].mxu0 }
 0x171   : > { %1867 = vst [vmem:[%s2881_s6 + $0x110] sm:$0xff] %v1152_v10 }
 0x174   : > { %v1065_v11 = vpop.f32.mrb[32].mxu1 }
 0x175   : > { %v1156_v12 = vpop.f32.mrb[32].mxu0  ;;  %1838 = vst [vmem:[%s2881_s6 + $0x30] sm:$0xff] %v1065_v11  ;;  %v1067_v13 = vpop.f32.mrb[33].mxu1 }
 0x176   : > { %1891 = vst [vmem:[%s2881_s6 + $0x1d0] sm:$0xff] %v1156_v12  ;;  %v1158_v14 = vpop.f32.mrb[33].mxu0  ;;  %1839 = vst [vmem:[%s2881_s6 + $0x38] sm:$0xff] %v1067_v13  ;;  %v1069_v15 = vpop.f32.mrb[34].mxu1 }
 0x177   : > { %1892 = vst [vmem:[%s2881_s6 + $0x1d8] sm:$0xff] %v1158_v14  ;;  %v1160_v16 = vpop.f32.mrb[34].mxu0  ;;  %1864 = vst [vmem:[%s2881_s6 + $0xf8] sm:$0xff] %v1069_v15  ;;  %v1071_v17 = vpop.f32.mrb[35].mxu1 }
 0x178   : > { %1916 = vst [vmem:[%s2881_s6 + $0x298] sm:$0xff] %v1160_v16  ;;  %v1162_v18 = vpop.f32.mrb[35].mxu0  ;;  %1865 = vst [vmem:[%s2881_s6 + $0x100] sm:$0xff] %v1071_v17 }
 0x179   : > { %1917 = vst [vmem:[%s2881_s6 + $0x2a0] sm:$0xff] %v1162_v18 }
 0x17c   : > { %v1075_v19 = vpop.f32.mrb[36].mxu1 }
 0x17d   : > { %v1166_v20 = vpop.f32.mrb[36].mxu0  ;;  %1889 = vst [vmem:[%s2881_s6 + $0x1c0] sm:$0xff] %v1075_v19  ;;  %v1077_v21 = vpop.f32.mrb[37].mxu1 }
 0x17e   : > { %1941 = vst [vmem:[%s2881_s6 + $0x360] sm:$0xff] %v1166_v20  ;;  %v1168_v22 = vpop.f32.mrb[37].mxu0  ;;  %1890 = vst [vmem:[%s2881_s6 + $0x1c8] sm:$0xff] %v1077_v21  ;;  %v1079_v23 = vpop.f32.mrb[38].mxu1 }
 0x17f   : > { %1942 = vst [vmem:[%s2881_s6 + $0x368] sm:$0xff] %v1168_v22  ;;  %v1170_v24 = vpop.f32.mrb[38].mxu0  ;;  %1914 = vst [vmem:[%s2881_s6 + $0x288] sm:$0xff] %v1079_v23  ;;  %v1081_v25 = vpop.f32.mrb[39].mxu1 }
 0x180   : > { %1966 = vst [vmem:[%s2881_s6 + $0x428] sm:$0xff] %v1170_v24  ;;  %v1172_v26 = vpop.f32.mrb[39].mxu0  ;;  %1915 = vst [vmem:[%s2881_s6 + $0x290] sm:$0xff] %v1081_v25 }
 0x181   : > { %1967 = vst [vmem:[%s2881_s6 + $0x430] sm:$0xff] %v1172_v26 }
 0x184   : > { %v1085_v28 = vpop.f32.mrb[40].mxu1 }
 0x185   : > { %v1176_v29 = vpop.f32.mrb[40].mxu0  ;;  %1939 = vst [vmem:[%s2881_s6 + $0x350] sm:$0xff] %v1085_v28  ;;  %v1087_v30 = vpop.f32.mrb[41].mxu1 }
 0x186   : > { %1991 = vst [vmem:[%s2881_s6 + $0x4f0] sm:$0xff] %v1176_v29  ;;  %v1178_v31 = vpop.f32.mrb[41].mxu0  ;;  %1940 = vst [vmem:[%s2881_s6 + $0x358] sm:$0xff] %v1087_v30  ;;  %v1089_v32 = vpop.f32.mrb[42].mxu1 }
 0x187   : > { %1992 = vst [vmem:[%s2881_s6 + $0x4f8] sm:$0xff] %v1178_v31  ;;  %v1180_v2 = vpop.f32.mrb[42].mxu0  ;;  %1964 = vst [vmem:[%s2881_s6 + $0x418] sm:$0xff] %v1089_v32  ;;  %v1091_v33 = vpop.f32.mrb[43].mxu1 }
 0x188   : > { %2016 = vst [vmem:[%s2881_s6 + $0x5b8] sm:$0xff] %v1180_v2  ;;  %v1182_v34 = vpop.f32.mrb[43].mxu0  ;;  %1965 = vst [vmem:[%s2881_s6 + $0x420] sm:$0xff] %v1091_v33 }
 0x189   : > { %2017 = vst [vmem:[%s2881_s6 + $0x5c0] sm:$0xff] %v1182_v34 }
 0x18c   : > { %v1095_v35 = vpop.f32.mrb[44].mxu1 }
 0x18d   : > { %v1186_v36 = vpop.f32.mrb[44].mxu0  ;;  %1989 = vst [vmem:[%s2881_s6 + $0x4e0] sm:$0xff] %v1095_v35  ;;  %v1097_v37 = vpop.f32.mrb[45].mxu1 }
 0x18e   : > { %2041 = vst [vmem:[%s2881_s6 + $0x680] sm:$0xff] %v1186_v36  ;;  %v1188_v38 = vpop.f32.mrb[45].mxu0  ;;  %1990 = vst [vmem:[%s2881_s6 + $0x4e8] sm:$0xff] %v1097_v37  ;;  %v1099_v45 = vpop.f32.mrb[46].mxu1 }
 0x18f   : > { %2042 = vst [vmem:[%s2881_s6 + $0x688] sm:$0xff] %v1188_v38  ;;  %v1190_v39 = vpop.f32.mrb[46].mxu0  ;;  %2014 = vst [vmem:[%s2881_s6 + $0x5a8] sm:$0xff] %v1099_v45  ;;  %v1101_v40 = vpop.f32.mrb[47].mxu1 }
 0x190   : > { %v1191_v41 = vpop.f32.mrb[47].mxu0  ;;  %2015 = vst [vmem:[%s2881_s6 + $0x5b0] sm:$0xff] %v1101_v40 }
 0x194   : > { %v1105_v42 = vpop.f32.mrb[48].mxu1 }
 0x195   : > { %v1308_v43 = vpop.f32.mrb[48].mxu0  ;;  %2039 = vst [vmem:[%s2881_s6 + $0x670] sm:$0xff] %v1105_v42  ;;  %v1107_v46 = vpop.f32.mrb[49].mxu1 }
 0x196   : > { %1844 = vst [vmem:[%s2881_s6 + $0x60] sm:$0xff] %v1308_v43  ;;  %v1310_v47 = vpop.f32.mrb[49].mxu0  ;;  %2040 = vst [vmem:[%s2881_s6 + $0x678] sm:$0xff] %v1107_v46  ;;  %v1109_v1 = vpop.f32.mrb[50].mxu1 }
 0x197   : > { %1845 = vst [vmem:[%s2881_s6 + $0x68] sm:$0xff] %v1310_v47  ;;  %v1312_v48 = vpop.f32.mrb[50].mxu0  ;;  %v1110_v49 = vpop.f32.mrb[51].mxu1 }
 0x198   : > { %1870 = vst [vmem:[%s2881_s6 + $0x128] sm:$0xff] %v1312_v48  ;;  %v1314_v50 = vpop.f32.mrb[51].mxu0 }
 0x199   : > { %1871 = vst [vmem:[%s2881_s6 + $0x130] sm:$0xff] %v1314_v50 }
 0x19c   : > { %v1227_v9 = vpop.f32.mrb[52].mxu1 }
 0x19d   : > { %v1318_v51 = vpop.f32.mrb[52].mxu0  ;;  %1842 = vst [vmem:[%s2881_s6 + $0x50] sm:$0xff] %v1227_v9  ;;  %v1229_v52 = vpop.f32.mrb[53].mxu1 }
 0x19e   : > { %1895 = vst [vmem:[%s2881_s6 + $0x1f0] sm:$0xff] %v1318_v51  ;;  %v1320_v53 = vpop.f32.mrb[53].mxu0  ;;  %1843 = vst [vmem:[%s2881_s6 + $0x58] sm:$0xff] %v1229_v52  ;;  %v1231_v54 = vpop.f32.mrb[54].mxu1 }
 0x19f   : > { %1896 = vst [vmem:[%s2881_s6 + $0x1f8] sm:$0xff] %v1320_v53  ;;  %v1322_v44 = vpop.f32.mrb[54].mxu0  ;;  %1868 = vst [vmem:[%s2881_s6 + $0x118] sm:$0xff] %v1231_v54  ;;  %v1233_v55 = vpop.f32.mrb[55].mxu1 }
 0x1a0   : > { %1920 = vst [vmem:[%s2881_s6 + $0x2b8] sm:$0xff] %v1322_v44  ;;  %v1324_v0 = vpop.f32.mrb[55].mxu0  ;;  %1869 = vst [vmem:[%s2881_s6 + $0x120] sm:$0xff] %v1233_v55 }
 0x1a1   : > { %1921 = vst [vmem:[%s2881_s6 + $0x2c0] sm:$0xff] %v1324_v0 }
 0x1a4   : > { %v1237_v56 = vpop.f32.mrb[56].mxu1 }
 0x1a5   : > { %v1328_v57 = vpop.f32.mrb[56].mxu0  ;;  %1893 = vst [vmem:[%s2881_s6 + $0x1e0] sm:$0xff] %v1237_v56  ;;  %v1239_v58 = vpop.f32.mrb[57].mxu1 }
 0x1a6   : > { %1945 = vst [vmem:[%s2881_s6 + $0x380] sm:$0xff] %v1328_v57  ;;  %v1330_v59 = vpop.f32.mrb[57].mxu0  ;;  %1894 = vst [vmem:[%s2881_s6 + $0x1e8] sm:$0xff] %v1239_v58  ;;  %v1241_v60 = vpop.f32.mrb[58].mxu1 }
 0x1a7   : > { %1946 = vst [vmem:[%s2881_s6 + $0x388] sm:$0xff] %v1330_v59  ;;  %v1332_v61 = vpop.f32.mrb[58].mxu0  ;;  %1918 = vst [vmem:[%s2881_s6 + $0x2a8] sm:$0xff] %v1241_v60  ;;  %v1243_v62 = vpop.f32.mrb[59].mxu1 }
 0x1a8   : > { %1970 = vst [vmem:[%s2881_s6 + $0x448] sm:$0xff] %v1332_v61  ;;  %v1334_v63 = vpop.f32.mrb[59].mxu0  ;;  %1919 = vst [vmem:[%s2881_s6 + $0x2b0] sm:$0xff] %v1243_v62 }
 0x1a9   : > { %1971 = vst [vmem:[%s2881_s6 + $0x450] sm:$0xff] %v1334_v63 }
 0x1ac   : > { %v1247_v27 = vpop.f32.mrb[60].mxu1 }
 0x1ad   : > { %v1338_v3 = vpop.f32.mrb[60].mxu0  ;;  %1943 = vst [vmem:[%s2881_s6 + $0x370] sm:$0xff] %v1247_v27  ;;  %v1249_v4 = vpop.f32.mrb[61].mxu1 }
 0x1ae   : > { %1995 = vst [vmem:[%s2881_s6 + $0x510] sm:$0xff] %v1338_v3  ;;  %v1340_v5 = vpop.f32.mrb[61].mxu0  ;;  %1944 = vst [vmem:[%s2881_s6 + $0x378] sm:$0xff] %v1249_v4  ;;  %v1251_v6 = vpop.f32.mrb[62].mxu1 }
 0x1af   : > { %1996 = vst [vmem:[%s2881_s6 + $0x518] sm:$0xff] %v1340_v5  ;;  %v1342_v7 = vpop.f32.mrb[62].mxu0  ;;  %1968 = vst [vmem:[%s2881_s6 + $0x438] sm:$0xff] %v1251_v6  ;;  %v1253_v8 = vpop.f32.mrb[63].mxu1 }
 0x1b0   : > { %2020 = vst [vmem:[%s2881_s6 + $0x5d8] sm:$0xff] %v1342_v7  ;;  %v1344_v10 = vpop.f32.mrb[63].mxu0  ;;  %1969 = vst [vmem:[%s2881_s6 + $0x440] sm:$0xff] %v1253_v8 }
 0x1b1   : > { %2021 = vst [vmem:[%s2881_s6 + $0x5e0] sm:$0xff] %v1344_v10 }
 0x1b4   : > { %v1257_v11 = vpop.f32.mrb[64].mxu1 }
 0x1b5   : > { %v1348_v12 = vpop.f32.mrb[64].mxu0  ;;  %1993 = vst [vmem:[%s2881_s6 + $0x500] sm:$0xff] %v1257_v11  ;;  %v1259_v13 = vpop.f32.mrb[65].mxu1 }
 0x1b6   : > { %2045 = vst [vmem:[%s2881_s6 + $0x6a0] sm:$0xff] %v1348_v12  ;;  %v1350_v14 = vpop.f32.mrb[65].mxu0  ;;  %1994 = vst [vmem:[%s2881_s6 + $0x508] sm:$0xff] %v1259_v13  ;;  %v1261_v15 = vpop.f32.mrb[66].mxu1 }
 0x1b7   : > { %2046 = vst [vmem:[%s2881_s6 + $0x6a8] sm:$0xff] %v1350_v14  ;;  %v1352_v16 = vpop.f32.mrb[66].mxu0  ;;  %2018 = vst [vmem:[%s2881_s6 + $0x5c8] sm:$0xff] %v1261_v15  ;;  %v1263_v17 = vpop.f32.mrb[67].mxu1 }
 0x1b8   : > { %v1353_v18 = vpop.f32.mrb[67].mxu0  ;;  %2019 = vst [vmem:[%s2881_s6 + $0x5d0] sm:$0xff] %v1263_v17 }
 0x1bc   : > { %v1267_v19 = vpop.f32.mrb[68].mxu1 }
 0x1bd   : > { %v1470_v20 = vpop.f32.mrb[68].mxu0  ;;  %2043 = vst [vmem:[%s2881_s6 + $0x690] sm:$0xff] %v1267_v19  ;;  %v1269_v21 = vpop.f32.mrb[69].mxu1 }
 0x1be   : > { %1848 = vst [vmem:[%s2881_s6 + $0x80] sm:$0xff] %v1470_v20  ;;  %v1472_v22 = vpop.f32.mrb[69].mxu0  ;;  %2044 = vst [vmem:[%s2881_s6 + $0x698] sm:$0xff] %v1269_v21  ;;  %v1271_v23 = vpop.f32.mrb[70].mxu1 }
 0x1bf   : > { %1849 = vst [vmem:[%s2881_s6 + $0x88] sm:$0xff] %v1472_v22  ;;  %v1474_v24 = vpop.f32.mrb[70].mxu0  ;;  %v1272_v25 = vpop.f32.mrb[71].mxu1 }
 0x1c0   : > { %1874 = vst [vmem:[%s2881_s6 + $0x148] sm:$0xff] %v1474_v24  ;;  %v1476_v26 = vpop.f32.mrb[71].mxu0 }
 0x1c1   : > { %1875 = vst [vmem:[%s2881_s6 + $0x150] sm:$0xff] %v1476_v26 }
 0x1c4   : > { %v1389_v28 = vpop.f32.mrb[72].mxu1 }
 0x1c5   : > { %v1480_v29 = vpop.f32.mrb[72].mxu0  ;;  %1846 = vst [vmem:[%s2881_s6 + $0x70] sm:$0xff] %v1389_v28  ;;  %v1391_v30 = vpop.f32.mrb[73].mxu1 }
 0x1c6   : > { %1899 = vst [vmem:[%s2881_s6 + $0x210] sm:$0xff] %v1480_v29  ;;  %v1482_v31 = vpop.f32.mrb[73].mxu0  ;;  %1847 = vst [vmem:[%s2881_s6 + $0x78] sm:$0xff] %v1391_v30  ;;  %v1393_v32 = vpop.f32.mrb[74].mxu1 }
 0x1c7   : > { %1900 = vst [vmem:[%s2881_s6 + $0x218] sm:$0xff] %v1482_v31  ;;  %v1484_v2 = vpop.f32.mrb[74].mxu0  ;;  %1872 = vst [vmem:[%s2881_s6 + $0x138] sm:$0xff] %v1393_v32  ;;  %v1395_v33 = vpop.f32.mrb[75].mxu1 }
 0x1c8   : > { %1924 = vst [vmem:[%s2881_s6 + $0x2d8] sm:$0xff] %v1484_v2  ;;  %v1486_v34 = vpop.f32.mrb[75].mxu0  ;;  %1873 = vst [vmem:[%s2881_s6 + $0x140] sm:$0xff] %v1395_v33 }
 0x1c9   : > { %1925 = vst [vmem:[%s2881_s6 + $0x2e0] sm:$0xff] %v1486_v34 }
 0x1cc   : > { %v1399_v35 = vpop.f32.mrb[76].mxu1 }
 0x1cd   : > { %v1490_v36 = vpop.f32.mrb[76].mxu0  ;;  %1897 = vst [vmem:[%s2881_s6 + $0x200] sm:$0xff] %v1399_v35  ;;  %v1401_v37 = vpop.f32.mrb[77].mxu1 }
 0x1ce   : > { %1949 = vst [vmem:[%s2881_s6 + $0x3a0] sm:$0xff] %v1490_v36  ;;  %v1492_v38 = vpop.f32.mrb[77].mxu0  ;;  %1898 = vst [vmem:[%s2881_s6 + $0x208] sm:$0xff] %v1401_v37  ;;  %v1403_v45 = vpop.f32.mrb[78].mxu1 }
 0x1cf   : > { %1950 = vst [vmem:[%s2881_s6 + $0x3a8] sm:$0xff] %v1492_v38  ;;  %v1494_v39 = vpop.f32.mrb[78].mxu0  ;;  %1922 = vst [vmem:[%s2881_s6 + $0x2c8] sm:$0xff] %v1403_v45  ;;  %v1405_v40 = vpop.f32.mrb[79].mxu1 }
 0x1d0   : > { %1974 = vst [vmem:[%s2881_s6 + $0x468] sm:$0xff] %v1494_v39  ;;  %v1496_v41 = vpop.f32.mrb[79].mxu0  ;;  %1923 = vst [vmem:[%s2881_s6 + $0x2d0] sm:$0xff] %v1405_v40 }
 0x1d1   : > { %1975 = vst [vmem:[%s2881_s6 + $0x470] sm:$0xff] %v1496_v41 }
 0x1d4   : > { %v1409_v42 = vpop.f32.mrb[80].mxu1 }
 0x1d5   : > { %v1500_v43 = vpop.f32.mrb[80].mxu0  ;;  %1947 = vst [vmem:[%s2881_s6 + $0x390] sm:$0xff] %v1409_v42  ;;  %v1411_v46 = vpop.f32.mrb[81].mxu1 }
 0x1d6   : > { %1999 = vst [vmem:[%s2881_s6 + $0x530] sm:$0xff] %v1500_v43  ;;  %v1502_v47 = vpop.f32.mrb[81].mxu0  ;;  %1948 = vst [vmem:[%s2881_s6 + $0x398] sm:$0xff] %v1411_v46  ;;  %v1413_v1 = vpop.f32.mrb[82].mxu1 }
 0x1d7   : > { %2000 = vst [vmem:[%s2881_s6 + $0x538] sm:$0xff] %v1502_v47  ;;  %v1504_v48 = vpop.f32.mrb[82].mxu0  ;;  %1972 = vst [vmem:[%s2881_s6 + $0x458] sm:$0xff] %v1413_v1  ;;  %v1415_v49 = vpop.f32.mrb[83].mxu1 }
 0x1d8   : > { %2024 = vst [vmem:[%s2881_s6 + $0x5f8] sm:$0xff] %v1504_v48  ;;  %v1506_v50 = vpop.f32.mrb[83].mxu0  ;;  %1973 = vst [vmem:[%s2881_s6 + $0x460] sm:$0xff] %v1415_v49 }
 0x1d9   : > { %2025 = vst [vmem:[%s2881_s6 + $0x600] sm:$0xff] %v1506_v50 }
 0x1dc   : > { %v1419_v9 = vpop.f32.mrb[84].mxu1 }
 0x1dd   : > { %v1510_v51 = vpop.f32.mrb[84].mxu0  ;;  %1997 = vst [vmem:[%s2881_s6 + $0x520] sm:$0xff] %v1419_v9  ;;  %v1421_v52 = vpop.f32.mrb[85].mxu1 }
 0x1de   : > { %2049 = vst [vmem:[%s2881_s6 + $0x6c0] sm:$0xff] %v1510_v51  ;;  %v1512_v53 = vpop.f32.mrb[85].mxu0  ;;  %1998 = vst [vmem:[%s2881_s6 + $0x528] sm:$0xff] %v1421_v52  ;;  %v1423_v54 = vpop.f32.mrb[86].mxu1 }
 0x1df   : > { %2050 = vst [vmem:[%s2881_s6 + $0x6c8] sm:$0xff] %v1512_v53  ;;  %v1514_v44 = vpop.f32.mrb[86].mxu0  ;;  %2022 = vst [vmem:[%s2881_s6 + $0x5e8] sm:$0xff] %v1423_v54  ;;  %v1425_v55 = vpop.f32.mrb[87].mxu1 }
 0x1e0   : > { %v1515_v0 = vpop.f32.mrb[87].mxu0  ;;  %2023 = vst [vmem:[%s2881_s6 + $0x5f0] sm:$0xff] %v1425_v55 }
 0x1e4   : > { %v1429_v56 = vpop.f32.mrb[88].mxu1 }
 0x1e5   : > { %v1632_v57 = vpop.f32.mrb[88].mxu0  ;;  %2047 = vst [vmem:[%s2881_s6 + $0x6b0] sm:$0xff] %v1429_v56  ;;  %v1431_v58 = vpop.f32.mrb[89].mxu1 }
 0x1e6   : > { %1852 = vst [vmem:[%s2881_s6 + $0xa0] sm:$0xff] %v1632_v57  ;;  %v1634_v59 = vpop.f32.mrb[89].mxu0  ;;  %2048 = vst [vmem:[%s2881_s6 + $0x6b8] sm:$0xff] %v1431_v58  ;;  %v1433_v60 = vpop.f32.mrb[90].mxu1 }
 0x1e7   : > { %1853 = vst [vmem:[%s2881_s6 + $0xa8] sm:$0xff] %v1634_v59  ;;  %v1636_v61 = vpop.f32.mrb[90].mxu0  ;;  %v1434_v62 = vpop.f32.mrb[91].mxu1 }
 0x1e8   : > { %1878 = vst [vmem:[%s2881_s6 + $0x168] sm:$0xff] %v1636_v61  ;;  %v1638_v63 = vpop.f32.mrb[91].mxu0 }
 0x1e9   : > { %1879 = vst [vmem:[%s2881_s6 + $0x170] sm:$0xff] %v1638_v63 }
 0x1ec   : > { %v1551_v27 = vpop.f32.mrb[92].mxu1 }
 0x1ed   : > { %v1642_v3 = vpop.f32.mrb[92].mxu0  ;;  %1850 = vst [vmem:[%s2881_s6 + $0x90] sm:$0xff] %v1551_v27  ;;  %v1553_v4 = vpop.f32.mrb[93].mxu1 }
 0x1ee   : > { %1903 = vst [vmem:[%s2881_s6 + $0x230] sm:$0xff] %v1642_v3  ;;  %v1644_v5 = vpop.f32.mrb[93].mxu0  ;;  %1851 = vst [vmem:[%s2881_s6 + $0x98] sm:$0xff] %v1553_v4  ;;  %v1555_v6 = vpop.f32.mrb[94].mxu1 }
 0x1ef   : > { %1904 = vst [vmem:[%s2881_s6 + $0x238] sm:$0xff] %v1644_v5  ;;  %v1646_v7 = vpop.f32.mrb[94].mxu0  ;;  %1876 = vst [vmem:[%s2881_s6 + $0x158] sm:$0xff] %v1555_v6  ;;  %v1557_v8 = vpop.f32.mrb[95].mxu1 }
 0x1f0   : > { %1928 = vst [vmem:[%s2881_s6 + $0x2f8] sm:$0xff] %v1646_v7  ;;  %v1648_v10 = vpop.f32.mrb[95].mxu0  ;;  %1877 = vst [vmem:[%s2881_s6 + $0x160] sm:$0xff] %v1557_v8 }
 0x1f1   : > { %1929 = vst [vmem:[%s2881_s6 + $0x300] sm:$0xff] %v1648_v10 }
 0x1f4   : > { %v1561_v11 = vpop.f32.mrb[96].mxu1 }
 0x1f5   : > { %v1652_v12 = vpop.f32.mrb[96].mxu0  ;;  %1901 = vst [vmem:[%s2881_s6 + $0x220] sm:$0xff] %v1561_v11  ;;  %v1563_v13 = vpop.f32.mrb[97].mxu1 }
 0x1f6   : > { %1953 = vst [vmem:[%s2881_s6 + $0x3c0] sm:$0xff] %v1652_v12  ;;  %v1654_v14 = vpop.f32.mrb[97].mxu0  ;;  %1902 = vst [vmem:[%s2881_s6 + $0x228] sm:$0xff] %v1563_v13  ;;  %v1565_v15 = vpop.f32.mrb[98].mxu1 }
 0x1f7   : > { %1954 = vst [vmem:[%s2881_s6 + $0x3c8] sm:$0xff] %v1654_v14  ;;  %v1656_v16 = vpop.f32.mrb[98].mxu0  ;;  %1926 = vst [vmem:[%s2881_s6 + $0x2e8] sm:$0xff] %v1565_v15  ;;  %v1567_v17 = vpop.f32.mrb[99].mxu1 }
 0x1f8   : > { %1978 = vst [vmem:[%s2881_s6 + $0x488] sm:$0xff] %v1656_v16  ;;  %v1658_v18 = vpop.f32.mrb[99].mxu0  ;;  %1927 = vst [vmem:[%s2881_s6 + $0x2f0] sm:$0xff] %v1567_v17 }
 0x1f9   : > { %1979 = vst [vmem:[%s2881_s6 + $0x490] sm:$0xff] %v1658_v18 }
 0x1fc   : > { %v1571_v19 = vpop.f32.mrb[100].mxu1 }
 0x1fd   : > { %v1662_v20 = vpop.f32.mrb[100].mxu0  ;;  %1951 = vst [vmem:[%s2881_s6 + $0x3b0] sm:$0xff] %v1571_v19  ;;  %v1573_v21 = vpop.f32.mrb[101].mxu1 }
 0x1fe   : > { %2003 = vst [vmem:[%s2881_s6 + $0x550] sm:$0xff] %v1662_v20  ;;  %v1664_v22 = vpop.f32.mrb[101].mxu0  ;;  %1952 = vst [vmem:[%s2881_s6 + $0x3b8] sm:$0xff] %v1573_v21  ;;  %v1575_v23 = vpop.f32.mrb[102].mxu1 }
 0x1ff   : > { %2004 = vst [vmem:[%s2881_s6 + $0x558] sm:$0xff] %v1664_v22  ;;  %v1666_v24 = vpop.f32.mrb[102].mxu0  ;;  %1976 = vst [vmem:[%s2881_s6 + $0x478] sm:$0xff] %v1575_v23  ;;  %v1577_v25 = vpop.f32.mrb[103].mxu1 }
 0x200   : > { %2028 = vst [vmem:[%s2881_s6 + $0x618] sm:$0xff] %v1666_v24  ;;  %v1668_v26 = vpop.f32.mrb[103].mxu0  ;;  %1977 = vst [vmem:[%s2881_s6 + $0x480] sm:$0xff] %v1577_v25 }
 0x201   : > { %2029 = vst [vmem:[%s2881_s6 + $0x620] sm:$0xff] %v1668_v26 }
 0x204   : > { %v1581_v28 = vpop.f32.mrb[104].mxu1 }
 0x205   : > { %v1672_v29 = vpop.f32.mrb[104].mxu0  ;;  %2001 = vst [vmem:[%s2881_s6 + $0x540] sm:$0xff] %v1581_v28  ;;  %v1583_v30 = vpop.f32.mrb[105].mxu1 }
 0x206   : > { %2053 = vst [vmem:[%s2881_s6 + $0x6e0] sm:$0xff] %v1672_v29  ;;  %v1674_v31 = vpop.f32.mrb[105].mxu0  ;;  %2002 = vst [vmem:[%s2881_s6 + $0x548] sm:$0xff] %v1583_v30  ;;  %v1585_v32 = vpop.f32.mrb[106].mxu1 }
 0x207   : > { %2054 = vst [vmem:[%s2881_s6 + $0x6e8] sm:$0xff] %v1674_v31  ;;  %v1676_v2 = vpop.f32.mrb[106].mxu0  ;;  %2026 = vst [vmem:[%s2881_s6 + $0x608] sm:$0xff] %v1585_v32  ;;  %v1587_v33 = vpop.f32.mrb[107].mxu1 }
 0x208   : > { %v1677_v34 = vpop.f32.mrb[107].mxu0  ;;  %2027 = vst [vmem:[%s2881_s6 + $0x610] sm:$0xff] %v1587_v33 }
 0x20c   : > { %v1591_v35 = vpop.f32.mrb[108].mxu1 }
 0x20d   : > { %v1794_v36 = vpop.f32.mrb[108].mxu0  ;;  %2051 = vst [vmem:[%s2881_s6 + $0x6d0] sm:$0xff] %v1591_v35  ;;  %v1593_v37 = vpop.f32.mrb[109].mxu1 }
 0x20e   : > { %1857 = vst.msk [vmem:[%s2881_s6 + $0xc0] sm:$0xff] %vm1856_vm2, %v1794_v36  ;;  %v2268_v38 = vpop.f32.mrb[109].mxu0  ;;  %2052 = vst [vmem:[%s2881_s6 + $0x6d8] sm:$0xff] %v1593_v37  ;;  %v1595_v45 = vpop.f32.mrb[110].mxu1 }
 0x20f   : > { %v1797_v39 = vpop.f32.mrb[110].mxu0  ;;  %v1596_v40 = vpop.f32.mrb[111].mxu1 }
 0x210   : > { %1882 = vst.msk [vmem:[%s2881_s6 + $0x188] sm:$0xff] %vm1856_vm2, %v1797_v39  ;;  %v2269_v41 = vpop.f32.mrb[111].mxu0 }
 0x214   : > { %v1713_v42 = vpop.f32.mrb[112].mxu1 }
 0x215   : > { %v1802_v43 = vpop.f32.mrb[112].mxu0  ;;  %1854 = vst [vmem:[%s2881_s6 + $0xb0] sm:$0xff] %v1713_v42  ;;  %v1715_v46 = vpop.f32.mrb[113].mxu1 }
 0x216   : > { %1907 = vst.msk [vmem:[%s2881_s6 + $0x250] sm:$0xff] %vm1856_vm2, %v1802_v43  ;;  %v2272_v47 = vpop.f32.mrb[113].mxu0  ;;  %1855 = vst [vmem:[%s2881_s6 + $0xb8] sm:$0xff] %v1715_v46  ;;  %v1717_v1 = vpop.f32.mrb[114].mxu1 }
 0x217   : > { %v1805_v48 = vpop.f32.mrb[114].mxu0  ;;  %1880 = vst [vmem:[%s2881_s6 + $0x178] sm:$0xff] %v1717_v1  ;;  %v1719_v49 = vpop.f32.mrb[115].mxu1 }
 0x218   : > { %1932 = vst.msk [vmem:[%s2881_s6 + $0x318] sm:$0xff] %vm1856_vm2, %v1805_v48  ;;  %v2273_v50 = vpop.f32.mrb[115].mxu0  ;;  %1881 = vst [vmem:[%s2881_s6 + $0x180] sm:$0xff] %v1719_v49 }
 0x21c   : > { %v1723_v9 = vpop.f32.mrb[116].mxu1 }
 0x21d   : > { %v1810_v51 = vpop.f32.mrb[116].mxu0  ;;  %1905 = vst [vmem:[%s2881_s6 + $0x240] sm:$0xff] %v1723_v9  ;;  %v1725_v52 = vpop.f32.mrb[117].mxu1 }
 0x21e   : > { %1957 = vst.msk [vmem:[%s2881_s6 + $0x3e0] sm:$0xff] %vm1856_vm2, %v1810_v51  ;;  %v2276_v53 = vpop.f32.mrb[117].mxu0  ;;  %1906 = vst [vmem:[%s2881_s6 + $0x248] sm:$0xff] %v1725_v52  ;;  %v1727_v54 = vpop.f32.mrb[118].mxu1 }
 0x21f   : > { %v1813_v44 = vpop.f32.mrb[118].mxu0  ;;  %1930 = vst [vmem:[%s2881_s6 + $0x308] sm:$0xff] %v1727_v54  ;;  %v1729_v55 = vpop.f32.mrb[119].mxu1 }
 0x220   : > { %1982 = vst.msk [vmem:[%s2881_s6 + $0x4a8] sm:$0xff] %vm1856_vm2, %v1813_v44  ;;  %v2277_v0 = vpop.f32.mrb[119].mxu0  ;;  %1931 = vst [vmem:[%s2881_s6 + $0x310] sm:$0xff] %v1729_v55 }
 0x224   : > { %v1733_v56 = vpop.f32.mrb[120].mxu1 }
 0x225   : > { %v1818_v57 = vpop.f32.mrb[120].mxu0  ;;  %1955 = vst [vmem:[%s2881_s6 + $0x3d0] sm:$0xff] %v1733_v56  ;;  %v1735_v58 = vpop.f32.mrb[121].mxu1 }
 0x226   : > { %2007 = vst.msk [vmem:[%s2881_s6 + $0x570] sm:$0xff] %vm1856_vm2, %v1818_v57  ;;  %v2280_v59 = vpop.f32.mrb[121].mxu0  ;;  %1956 = vst [vmem:[%s2881_s6 + $0x3d8] sm:$0xff] %v1735_v58  ;;  %v1737_v60 = vpop.f32.mrb[122].mxu1 }
 0x227   : > { %v1821_v61 = vpop.f32.mrb[122].mxu0  ;;  %1980 = vst [vmem:[%s2881_s6 + $0x498] sm:$0xff] %v1737_v60  ;;  %v1739_v62 = vpop.f32.mrb[123].mxu1 }
 0x228   : > { %2032 = vst.msk [vmem:[%s2881_s6 + $0x638] sm:$0xff] %vm1856_vm2, %v1821_v61  ;;  %v2281_v63 = vpop.f32.mrb[123].mxu0  ;;  %1981 = vst [vmem:[%s2881_s6 + $0x4a0] sm:$0xff] %v1739_v62 }
 0x22c   : > { %v1743_v27 = vpop.f32.mrb[124].mxu1 }
 0x22d   : > { %v1826_v3 = vpop.f32.mrb[124].mxu0  ;;  %2005 = vst [vmem:[%s2881_s6 + $0x560] sm:$0xff] %v1743_v27  ;;  %v1745_v4 = vpop.f32.mrb[125].mxu1 }
 0x22e   : > { %2057 = vst.msk [vmem:[%s2881_s6 + $0x700] sm:$0xff] %vm1856_vm2, %v1826_v3  ;;  %v2284_v5 = vpop.f32.mrb[125].mxu0  ;;  %2006 = vst [vmem:[%s2881_s6 + $0x568] sm:$0xff] %v1745_v4  ;;  %v1747_v6 = vpop.f32.mrb[126].mxu1 }
 0x22f   : > { %v1829_v7 = vpop.f32.mrb[126].mxu0  ;;  %2030 = vst [vmem:[%s2881_s6 + $0x628] sm:$0xff] %v1747_v6  ;;  %v1749_v8 = vpop.f32.mrb[127].mxu1 }
 0x230   : > { %v2285_v10 = vpop.f32.mrb[127].mxu0  ;;  %2031 = vst [vmem:[%s2881_s6 + $0x630] sm:$0xff] %v1749_v8 }
 0x234   : > { %v1753_v11 = vpop.f32.mrb[128].mxu1 }
 0x235   : > { %2055 = vst [vmem:[%s2881_s6 + $0x6f0] sm:$0xff] %v1753_v11  ;;  %v1755_v12 = vpop.f32.mrb[129].mxu1 }
 0x236   : > { %2056 = vst [vmem:[%s2881_s6 + $0x6f8] sm:$0xff] %v1755_v12  ;;  %v1757_v13 = vpop.f32.mrb[130].mxu1 }
 0x237   : > { %v1758_v14 = vpop.f32.mrb[131].mxu1 }
 0x238   : > { %2447 = shalt.err (!%p2444_p6)
}
 0x239   : > { %s2448_s30 = scalar_lea.hbm %s3155_s11, 28800  ;;  %s2452_s5 = scalar_lea.hbm %s3212_s3, 115200 }
 0x23a   : > { %p2449_p7 = scmp.ne.s32.totalorder %s3155_s11, %s2448_s30  ;;  %p2453_p0 = scmp.lt.u32.totalorder %s3155_s11, %s3212_s3 }
 0x23b   : > { %p2454_p4 = scmp.lt.u32.totalorder %s2452_s5, %s2448_s30  ;;  %p2456_p1 = scmp.lt.u32.totalorder %s2448_s30, %s3155_s11 }
 0x23c   : > { %p2450_p9 = pnand %p2449_p7, %p3224_p8 }
 0x23d   : > { %p2455_p13 = por %p2454_p4, %p2453_p0 }
 0x23e   : > { %p2451_p12 = pneg %p2450_p9 }
 0x23f   : > { %p2457_p10 = por %p2456_p1, %p2455_p13 }
 0x241   : > { %p2458_p11 = pnand %p2457_p10, %p2451_p12 }
 0x243   : > { %2461 = shalt.err (!%p2458_p11)
}
 0x244   : > { %s2530_s4 = smov 3200   ;;  %s2531_s6 = smov 200  }
 0x245   : > { %2302 = dma.vmem_to_hbm [thread:$0]  (%p3224_p8), %s3157_s8, 28800, %s3155_s11, %s3163_s15, %s2530_s4, %s2530_s4, %s2531_s6  }
 0x246 PF: > { %p2320_p2 = scmp.ge.s32.totalorder %s2520_s17, 2  ;;  %s2090_s7 = sand.u32 1, %s2500_s12  }
 0x247   : > { %p3225_p3 = scmp.ne.s32.totalorder %s3218_s24, 0  ;;  %s2091_s9 = scalar_lea.sflag [#allocation4], %s2090_s7 }
 0x249   : > { %p2312_p5 = pnand %p2320_p2, %p3225_p3 }
 0x24b   : > { %2495 = dma.done.wait (!%p2312_p5), %s2091_s9, 28800  }
 0x24c   : > { %2497 = vsyncadd (!%p2312_p5), %s2091_s9, 4294938496  ;;  %s18_s17 = sadd.s32 1, %s2520_s17   ;;  %s3226_s12 = smov %s2504_s13 }
 0x24d   : > { %p15_p6 = scmp.ge.s32.totalorder %s18_s17, 6   ;;  %s3227_s13 = smov %s2508_s14 }
 0x24e   : > { %s3228_s14 = smov %s2605_s25  ;;  %s3229_s15 = smov %s2516_s16 }
 0x24f   : > { %s3230_s16 = smov %s3232_s20  ;;  %17 = sbr.rel (!%p15_p6) target bundleno = 6 (0x6), region = 78 }
 0x256   :  { %2096 = vsyncpa [#allocation3], 1 }
 0x257   :  { %2098 = vsyncpa [#allocation3 + $0x1], 1 }
 0x258   :  { %2099 = vsyncpa [#allocation6], 1 }
 0x259   :  { %2100 = vsyncpa [#allocation4], 1 }
 0x25a   :  { %2102 = vsyncpa [#allocation4 + $0x1], 1 }

</bundles_post_ra>
